<compile_context>
chip_gen: v7x
topology: tpu7x:2x2x1
jax: 0.10.0
libtpu: 0.0.40
codegen_flags: <defaults>
</compile_context>

<pallas_src>
import jax
import jax.numpy as jnp
from jax import lax
from jax.experimental import pallas as pl
from jax.experimental.pallas import tpu as pltpu


# -----------------------------------------------------------------------------
# Hardware-aware sizing helpers
# -----------------------------------------------------------------------------
def _vmem_capacity_bytes():
    try:
        return int(pltpu.get_tpu_info().vmem_capacity_bytes)
    except Exception:
        return 64 * 1024 * 1024  # conservative fallback (v7x per-core VMEM)


def _round_up(x, m):
    return ((x + m - 1) // m) * m


def _pick_n_tile(N):
    """Lane tile for the distance kernel: multiple of 128 dividing N, else N."""
    if N % 128 != 0:
        return N
    for t in (1024, 512, 256, 128):
        if t <= N and N % t == 0:
            return t
    return N


def _plan_chunks(K, Sp, cin_pad, max_c, cout):
    """Pick the K-chunk size (grid tile) and a VMEM limit, generation-aware."""
    cap = _vmem_capacity_bytes()
    # ~6-8 MiB chunks on 128 MiB-VMEM parts (v5e/v6e), ~2-4 MiB on v7x (64 MiB).
    chunk_cap = (8 << 20) if cap >= (100 << 20) else (3 << 20)
    # Per lane-column bytes: double-buffered bf16 x block + live f32 z + bf16 h.
    per_lane = 4 * cin_pad + 6 * max_c + 16
    kc_budget = max(1, chunk_cap // (per_lane * Sp))
    kc = 1
    for d in range(min(K, kc_budget), 0, -1):
        if K % d == 0:
            kc = d
            break
    est = (2 * 2 * cin_pad * kc * Sp      # double-buffered bf16 input blocks
           + 6 * max_c * kc * Sp          # f32 z + bf16 h intermediates
           + 2 * 4 * cout * Sp            # output/accumulator block (x2 buffers)
           + (2 << 20))                   # weights, biases, compiler scratch
    vmem_limit = int(min(max(2 * est, 32 << 20), int(0.9 * cap)))
    return kc, vmem_limit


# -----------------------------------------------------------------------------
# Pallas kernel 1: pairwise squared distance (pure VPU, full f32)
#   dist[b, s, n] = sum_c (new_xyz[b, s, c] - xyz[b, c, n])^2
# Computed once per forward and reused for every radius.
# -----------------------------------------------------------------------------
def _sqdist_kernel(src_ref, dst_ref, o_ref):
    src = src_ref[0]                      # [S, 3]   queries (sublane-major)
    dst = dst_ref[0]                      # [3, Nt]  points, lane-dense on N
    acc = None
    for c in range(3):                    # 3 rank-1 VPU passes; no MXU, no cancellation
        diff = src[:, c:c + 1] - dst[c:c + 1, :]     # [S, Nt]
        sq = diff * diff
        acc = sq if acc is None else acc + sq
    o_ref[0] = acc


def square_distance_pallas(new_xyz_nc, xyz_cm):
    """new_xyz_nc: [B, S, 3], xyz_cm: [B, 3, N] -> [B, S, N] float32."""
    B, S, _ = new_xyz_nc.shape
    _, _, N = xyz_cm.shape
    nt = _pick_n_tile(N)
    return pl.pallas_call(
        _sqdist_kernel,
        grid=(B, N // nt),
        in_specs=[
            pl.BlockSpec((1, S, 3), lambda b, n: (b, 0, 0)),
            pl.BlockSpec((1, 3, nt), lambda b, n: (b, 0, n)),
        ],
        out_specs=pl.BlockSpec((1, S, nt), lambda b, n: (b, 0, n)),
        out_shape=jax.ShapeDtypeStruct((B, S, N), jnp.float32),
        compiler_params=pltpu.CompilerParams(
            dimension_semantics=("parallel", "parallel")),
    )(new_xyz_nc.astype(jnp.float32), xyz_cm.astype(jnp.float32))


# -----------------------------------------------------------------------------
# Pallas kernel 2: stacked 1x1-conv (folded BN) + ReLU, then max over K neighbors.
# Channel-major: x block is [Cin_pad, kc*Sp] (k-major, s-minor, lane = Sp),
# W_j is [C_j, C_{j-1}] bf16, output block [Cout, Sp] f32 (lane-dense).
# K is chunked on a trailing "arbitrary" grid axis; the output block itself is
# the running-max accumulator. The LAST layer's bias+ReLU is applied once on the
# accumulator (after the max over all K) instead of per chunk.
# -----------------------------------------------------------------------------
def _make_mlp_max_kernel(num_layers, kc, Sp):
    def kernel(*refs):
        x_ref = refs[0]                                       # [1, Cin_pad, kc*Sp] bf16
        w_refs = refs[1:1 + num_layers]                       # [C_j, C_{j-1}]      bf16
        b_refs = refs[1 + num_layers:1 + 2 * num_layers]      # [C_j, 1]            f32
        o_ref = refs[1 + 2 * num_layers]                      # [1, Cout, Sp]       f32

        kstep = pl.program_id(1)

        h = x_ref[0]                                          # bf16 [Cin_pad, kc*Sp]
        z = None
        for j in range(num_layers):
            # bf16 x bf16 MXU matmul over the whole chunk (wide lanes amortize
            # weight push for these tiny-contraction matmuls), f32 accumulation.
            z = jnp.dot(w_refs[j][...], h, preferred_element_type=jnp.float32)
            if j + 1 < num_layers:
                # TODO(synk): on bf16-VPU generations (v6e/v7x) this epilogue could
                # run packed bf16; kept f32 so the same kernel is safe on v5e.
                z = jnp.maximum(z + b_refs[j][...], 0.0)
                h = z.astype(jnp.bfloat16)

        # Raw last-layer pre-activations [Cout, kc*Sp]; reduce over the kc
        # neighbors of this chunk with a pairwise max tree (short dep chain).
        parts = [z[:, i * Sp:(i + 1) * Sp] for i in range(kc)]
        while len(parts) > 1:
            nxt = [jnp.maximum(parts[i], parts[i + 1])
                   for i in range(0, len(parts) - 1, 2)]
            if len(parts) % 2:
                nxt.append(parts[-1])
            parts = nxt
        cmax = parts[0]                                       # [Cout, Sp]

        @pl.when(kstep == 0)
        def _():
            o_ref[0] = cmax

        @pl.when(kstep > 0)
        def _():
            o_ref[0] = jnp.maximum(o_ref[0], cmax)

        @pl.when(kstep == pl.num_programs(1) - 1)
        def _():
            # Hoisted last-layer bias + ReLU: applied ONCE on the [Cout, Sp]
            # accumulator (max commutes with monotone per-channel bias + ReLU).
            o_ref[0] = jnp.maximum(o_ref[0] + b_refs[num_layers - 1][...], 0.0)

    return kernel


def mlp_max_pallas(x_flat, Ws, bs, Sp, K, kc, vmem_limit):
    """x_flat: [B, Cin_pad, K*Sp] bf16 (k-major, s-minor grouped features).
    Ws[j]: [C_j, C_{j-1}] bf16 (BN folded), bs[j]: [C_j, 1] f32.
    Returns [B, Cout, Sp] float32 (channel-major, lane-dense, no transpose)."""
    B, Cin_pad, KSp = x_flat.shape
    assert KSp == K * Sp and K % kc == 0
    num_layers = len(Ws)
    Cout = Ws[-1].shape[0]

    in_specs = [pl.BlockSpec((1, Cin_pad, kc * Sp), lambda b, k: (b, 0, k))]
    in_specs += [pl.BlockSpec(w.shape, lambda b, k: (0, 0)) for w in Ws]
    in_specs += [pl.BlockSpec(bias.shape, lambda b, k: (0, 0)) for bias in bs]

    return pl.pallas_call(
        _make_mlp_max_kernel(num_layers, kc, Sp),
        grid=(B, K // kc),
        in_specs=in_specs,
        out_specs=pl.BlockSpec((1, Cout, Sp), lambda b, k: (b, 0, 0)),
        out_shape=jax.ShapeDtypeStruct((B, Cout, Sp), jnp.float32),
        compiler_params=pltpu.CompilerParams(
            dimension_semantics=("parallel", "arbitrary"),
            vmem_limit_bytes=vmem_limit),
    )(x_flat, *Ws, *bs)


# -----------------------------------------------------------------------------
# Plain-JAX glue reproducing the reference helper functions
# -----------------------------------------------------------------------------
def farthest_point_sample(xyz, npoint):
    """xyz: [B, N, 3] -> [B, npoint] int32. Deterministic start at index 0."""
    # TODO(synk): FPS is npoint sequential argmax steps; a Pallas kernel keeping
    # the [B,N] distance state in VMEM would remove npoint HBM round trips.
    B, N, _ = xyz.shape

    def body(i, carry):
        centroids, distance, farthest = carry
        centroids = centroids.at[:, i].set(farthest)
        idx = jnp.broadcast_to(farthest[:, None, None], (B, 1, 3))
        centroid = jnp.take_along_axis(xyz, idx, axis=1)          # [B, 1, 3]
        dist = jnp.sum((xyz - centroid) ** 2, axis=-1)            # [B, N]
        distance = jnp.where(dist < distance, dist, distance)
        farthest = jnp.argmax(distance, axis=-1).astype(jnp.int32)
        return centroids, distance, farthest

    centroids = jnp.zeros((B, npoint), jnp.int32)
    distance = jnp.full((B, N), 1e10, jnp.float32)
    farthest = jnp.zeros((B,), jnp.int32)   # torch.randint replaced deterministically
    centroids, _, _ = lax.fori_loop(0, npoint, body, (centroids, distance, farthest))
    return centroids


def ball_group(sqrdists, radius, nsample):
    """sqrdists: [B, S, N] f32 (precomputed once) ->
       (group_idx [B,S,K] int32, sq [B,S,K] f32).
    Same semantics as the reference query_ball_point (first K in-ball indices in
    ascending index order), but using top_k instead of a full O(N log N) sort."""
    # TODO(synk): fusing the per-radius threshold + first-K selection into a
    # Pallas pass would read sqrdists from HBM once for all radii.
    B, S, N = sqrdists.shape
    base = jnp.broadcast_to(jnp.arange(N, dtype=jnp.int32), (B, S, N))
    gi = jnp.where(sqrdists > radius ** 2, jnp.int32(N), base)    # f32 threshold
    neg_top, _ = lax.top_k(-gi, nsample)          # K smallest indices (ascending)
    gi = -neg_top                                                  # [B, S, K]
    first = jnp.broadcast_to(gi[:, :, :1], gi.shape)
    gi = jnp.where(gi == N, first, gi)
    sq = jnp.take_along_axis(sqrdists, gi, axis=-1)                # [B, S, K]
    return gi, sq


# -----------------------------------------------------------------------------
# The module
# -----------------------------------------------------------------------------
class PointNetSetAbstractionMsgPallas:
    def __init__(self, npoint, radius_list, nsample_list, in_channel, mlp_list, key):
        self.npoint = npoint
        self.npoint_pad = _round_up(npoint, 128)   # lane-dense output columns
        self.radius_list = radius_list
        self.nsample_list = nsample_list
        self.mlp_list = mlp_list
        eps = 1e-5

        self.cin = in_channel + 7                       # [points(D), rel_xyz(3), yuan(3), sq(1)]
        self.cin_pad = _round_up(self.cin, 8)           # sublane-aligned contraction dim

        # Deterministic parameter init; BatchNorm (eval mode) folded into conv W / b.
        # Weights stored channel-major [Cout, Cin] in bf16 (MXU operands), biases f32.
        self.weights = []   # per scale: list of [C_j, C_{j-1}] bf16
        self.biases = []    # per scale: list of [C_j, 1] f32
        self.kc_list = []   # per scale: K-chunk size for the Pallas grid
        self.vmem_list = []
        for si, mlp in enumerate(mlp_list):
            Ws, bs = [], []
            last = self.cin
            for li, out_ch in enumerate(mlp):
                key, kw, kb, kg, kbe, km, kv = jax.random.split(key, 7)
                w = 0.1 * jax.random.normal(kw, (out_ch, last), jnp.float32)   # conv weight
                b = 0.1 * jax.random.normal(kb, (out_ch,), jnp.float32)        # conv bias
                gamma = 1.0 + 0.1 * jax.random.normal(kg, (out_ch,), jnp.float32)
                beta = 0.1 * jax.random.normal(kbe, (out_ch,), jnp.float32)
                running_mean = 0.1 * jax.random.normal(km, (out_ch,), jnp.float32)
                running_var = 1.0 + 0.1 * jax.random.uniform(kv, (out_ch,), jnp.float32)
                s = gamma / jnp.sqrt(running_var + eps)
                Wf = w * s[:, None]                      # [Cout, Cin]
                bf = (b - running_mean) * s + beta       # [Cout]
                if li == 0 and self.cin_pad > self.cin:  # zero columns for padded input channels
                    Wf = jnp.pad(Wf, ((0, 0), (0, self.cin_pad - self.cin)))
                Ws.append(Wf.astype(jnp.bfloat16))
                bs.append(bf[:, None].astype(jnp.float32))
                last = out_ch
            self.weights.append(Ws)
            self.biases.append(bs)
            kc, vlim = _plan_chunks(nsample_list[si], self.npoint_pad,
                                    self.cin_pad, max(mlp), mlp[-1])
            self.kc_list.append(kc)
            self.vmem_list.append(vlim)
        # TODO(synk): conv_blocks2/bn_blocks2 (color-branch MLP) parameters are not
        # materialized; in the reference forward their output never reaches any return value.

    def __call__(self, xyz, points, color, colors):
        """xyz: [B,3,N], points: [B,D,N], color: [B,3,N], colors: [B,D,N].
        Returns (new_xyz [B,3,S], new_points_concat [B,sum(mlp[-1]),S],
                 new_color [B,3,S], new_colors_concat [B,sum(mlp[-1]),S])."""
        xyz_cm = xyz.astype(jnp.float32)        # [B, 3, N] channel-major (as given)
        color_cm = color.astype(jnp.float32)    # [B, 3, N]
        points_bf = points.astype(jnp.bfloat16)  # [B, D, N] bf16 gather source (halves HBM bytes)
        B, _, N = xyz_cm.shape
        S = self.npoint
        Sp = self.npoint_pad

        xyz_nc = jnp.transpose(xyz_cm, (0, 2, 1))                 # [B, N, 3] for FPS
        fps_idx = farthest_point_sample(xyz_nc, S)                # deterministic -> both FPS calls identical
        new_xyz_cm = jnp.take_along_axis(xyz_cm, fps_idx[:, None, :], axis=2)      # [B, 3, S]
        new_color_cm = jnp.take_along_axis(color_cm, fps_idx[:, None, :], axis=2)  # [B, 3, S]
        new_xyz_nc = jnp.transpose(new_xyz_cm, (0, 2, 1))         # [B, S, 3]

        # Squared distances computed ONCE (hoisted out of the per-radius loop), full f32.
        sqrdists = square_distance_pallas(new_xyz_nc, xyz_cm)     # [B, S, N] f32

        # Pad the query axis to a lane-dense multiple of 128 (at the index level, cheap).
        pad_s = Sp - S
        new_xyz_p = (jnp.pad(new_xyz_cm, ((0, 0), (0, 0), (0, pad_s)))
                     if pad_s else new_xyz_cm)                    # [B, 3, Sp]

        # TODO(synk): the neighbor gather/concat is still an XLA take_along_axis into
        # an HBM slab; fully fusing it into the MLP kernel (in-kernel gather from a
        # resident [Cin, N] slab) would remove the K*Sp-sized HBM round trip.
        new_points_list = []
        for i, radius in enumerate(self.radius_list):
            K = self.nsample_list[i]
            group_idx, sq = ball_group(sqrdists, radius, K)       # [B,S,K], [B,S,K]
            if pad_s:
                group_idx = jnp.pad(group_idx, ((0, 0), (0, pad_s), (0, 0)))  # idx 0 (valid)
                sq = jnp.pad(sq, ((0, 0), (0, pad_s), (0, 0)))
            # Gather directly in channel-major layout, flat (k-major, s-minor) -> lane = Sp.
            idx_ks = jnp.transpose(group_idx, (0, 2, 1)).reshape(B, 1, K * Sp)       # [B,1,K*Sp]
            g_pts = jnp.take_along_axis(points_bf, idx_ks, axis=2)                   # bf16 [B,D,K*Sp]
            g_xyz = jnp.take_along_axis(xyz_cm, idx_ks, axis=2)                      # f32  [B,3,K*Sp]
            yuan_f = jnp.broadcast_to(new_xyz_p[:, :, None, :],
                                      (B, 3, K, Sp)).reshape(B, 3, K * Sp)           # f32
            rel = (g_xyz - yuan_f).astype(jnp.bfloat16)                              # relative coords
            yuan = yuan_f.astype(jnp.bfloat16)
            sq_ck = jnp.transpose(sq, (0, 2, 1)).reshape(B, 1, K * Sp).astype(jnp.bfloat16)

            grouped = jnp.concatenate([g_pts, rel, yuan, sq_ck], axis=1)             # [B, D+7, K*Sp]
            assert grouped.shape[1] == self.cin
            if self.cin_pad > self.cin:
                grouped = jnp.pad(grouped, ((0, 0), (0, self.cin_pad - self.cin), (0, 0)))

            # Hot path: stacked 1x1-conv+BN+ReLU then max over K neighbors (Pallas kernel),
            # output already [B, Cout, Sp] -> slice query padding, no transpose.
            new_points_p = mlp_max_pallas(grouped, self.weights[i], self.biases[i],
                                          Sp, K, self.kc_list[i], self.vmem_list[i])
            new_points_list.append(new_points_p[:, :, :S])

        new_points_concat = jnp.concatenate(new_points_list, axis=1)
        # Reference: new_colors_concat = torch.cat(new_points_list, dim=1)  (same tensor list)
        new_colors_concat = new_points_concat
        return new_xyz_cm, new_points_concat, new_color_cm, new_colors_concat


# -----------------------------------------------------------------------------
if __name__ == "__main__":
    key = jax.random.PRNGKey(0)
    B, N, D = 2, 64, 4          # batch, points, feature channels (in_channel = D)
    npoint = 16
    radius_list = [0.2, 0.4]
    nsample_list = [8, 16]
    mlp_list = [[16, 32], [16, 32]]
    in_channel = D

    k1, k2, k3, k4, kp = jax.random.split(key, 5)
    xyz = jax.random.uniform(k1, (B, 3, N), jnp.float32)
    points = jax.random.normal(k2, (B, D, N), jnp.float32)
    color = jax.random.uniform(k3, (B, 3, N), jnp.float32)
    colors = jax.random.normal(k4, (B, D, N), jnp.float32)

    module = PointNetSetAbstractionMsgPallas(
        npoint, radius_list, nsample_list, in_channel, mlp_list, kp
    )
    fwd = jax.jit(lambda a, b_, c, d: module(a, b_, c, d))
    new_xyz, new_points_concat, new_color, new_colors_concat = fwd(xyz, points, color, colors)
    jax.block_until_ready((new_xyz, new_points_concat, new_color, new_colors_concat))

    assert new_xyz.shape == (B, 3, npoint)
    assert new_color.shape == (B, 3, npoint)
    assert new_points_concat.shape == (B, sum(m[-1] for m in mlp_list), npoint)
    assert new_colors_concat.shape == new_points_concat.shape
    assert bool(jnp.all(jnp.isfinite(new_points_concat)))
    print("KERNEL_OK")
</pallas_src>

<mosaic_0001>
module attributes {stable_mosaic.version = 11 : i64} {
  func.func @_sqdist_kernel(%arg0: i32, %arg1: i32, %arg2: memref<1x16x3xf32, #tpu.memory_space<vmem>>, %arg3: memref<1x3x64xf32, #tpu.memory_space<vmem>>, %arg4: memref<1x16x64xf32, #tpu.memory_space<vmem>>) attributes {dimension_semantics = [#tpu.dimension_semantics<parallel>, #tpu.dimension_semantics<parallel>], iteration_bounds = array<i64: 2, 1>, scalar_prefetch = 0 : i64, scratch_operands = 0 : i64, tpu.core_type = #tpu.core_type<tc>, window_params = [{transform_indices = @transform_0, window_bounds = array<i64: 1, 16, 3>}, {transform_indices = @transform_1, window_bounds = array<i64: 1, 3, 64>}, {transform_indices = @transform_2, window_bounds = array<i64: 1, 16, 64>}]} {
    %c0 = arith.constant 0 : index
    %c0_0 = arith.constant 0 : index
    %c0_1 = arith.constant 0 : index
    %0 = vector.load %arg2[%c0, %c0_0, %c0_1] : memref<1x16x3xf32, #tpu.memory_space<vmem>>, vector<1x16x3xf32>
    %1 = vector.shape_cast %0 : vector<1x16x3xf32> to vector<16x3xf32>
    %c0_2 = arith.constant 0 : index
    %c0_3 = arith.constant 0 : index
    %c0_4 = arith.constant 0 : index
    %2 = vector.load %arg3[%c0_2, %c0_3, %c0_4] : memref<1x3x64xf32, #tpu.memory_space<vmem>>, vector<1x3x64xf32>
    %3 = vector.shape_cast %2 : vector<1x3x64xf32> to vector<3x64xf32>
    %4 = vector.extract_strided_slice %1 {offsets = [0, 0], sizes = [16, 1], strides = [1, 1]} : vector<16x3xf32> to vector<16x1xf32>
    %5 = vector.extract_strided_slice %3 {offsets = [0, 0], sizes = [1, 64], strides = [1, 1]} : vector<3x64xf32> to vector<1x64xf32>
    %6 = vector.broadcast %4 : vector<16x1xf32> to vector<16x64xf32>
    %7 = vector.broadcast %5 : vector<1x64xf32> to vector<16x64xf32>
    %8 = arith.subf %6, %7 : vector<16x64xf32>
    %9 = arith.mulf %8, %8 : vector<16x64xf32>
    %10 = vector.extract_strided_slice %1 {offsets = [0, 1], sizes = [16, 1], strides = [1, 1]} : vector<16x3xf32> to vector<16x1xf32>
    %11 = vector.extract_strided_slice %3 {offsets = [1, 0], sizes = [1, 64], strides = [1, 1]} : vector<3x64xf32> to vector<1x64xf32>
    %12 = vector.broadcast %10 : vector<16x1xf32> to vector<16x64xf32>
    %13 = vector.broadcast %11 : vector<1x64xf32> to vector<16x64xf32>
    %14 = arith.subf %12, %13 : vector<16x64xf32>
    %15 = arith.mulf %14, %14 : vector<16x64xf32>
    %16 = arith.addf %9, %15 : vector<16x64xf32>
    %17 = vector.extract_strided_slice %1 {offsets = [0, 2], sizes = [16, 1], strides = [1, 1]} : vector<16x3xf32> to vector<16x1xf32>
    %18 = vector.extract_strided_slice %3 {offsets = [2, 0], sizes = [1, 64], strides = [1, 1]} : vector<3x64xf32> to vector<1x64xf32>
    %19 = vector.broadcast %17 : vector<16x1xf32> to vector<16x64xf32>
    %20 = vector.broadcast %18 : vector<1x64xf32> to vector<16x64xf32>
    %21 = arith.subf %19, %20 : vector<16x64xf32>
    %22 = arith.mulf %21, %21 : vector<16x64xf32>
    %23 = arith.addf %16, %22 : vector<16x64xf32>
    %c0_5 = arith.constant 0 : index
    %c0_6 = arith.constant 0 : index
    %c0_7 = arith.constant 0 : index
    %24 = vector.load %arg4[%c0_5, %c0_6, %c0_7] : memref<1x16x64xf32, #tpu.memory_space<vmem>>, vector<1x16x64xf32>
    %25 = vector.shape_cast %24 : vector<1x16x64xf32> to vector<16x64xf32>
    %26 = vector.shape_cast %23 : vector<16x64xf32> to vector<1x16x64xf32>
    tpu.vector_store %arg4[%c0_5, %c0_6, %c0_7], %26 {strides = array<i32>} : memref<1x16x64xf32, #tpu.memory_space<vmem>>, vector<1x16x64xf32>,
    return
  }
  func.func @transform_0(%arg0: i32, %arg1: i32) -> (i32, i32, i32) {
    %c0_i32 = arith.constant 0 : i32
    %c0_i32_0 = arith.constant 0 : i32
    %c0_i32_1 = arith.constant 0 : i32
    return %arg0, %c0_i32, %c0_i32_0 : i32, i32, i32
  }
  func.func @transform_1(%arg0: i32, %arg1: i32) -> (i32, i32, i32) {
    %c0_i32 = arith.constant 0 : i32
    %c0_i32_0 = arith.constant 0 : i32
    return %arg0, %c0_i32, %arg1 : i32, i32, i32
  }
  func.func @transform_2(%arg0: i32, %arg1: i32) -> (i32, i32, i32) {
    %c0_i32 = arith.constant 0 : i32
    %c0_i32_0 = arith.constant 0 : i32
    return %arg0, %c0_i32, %arg1 : i32, i32, i32
  }
}

module attributes {stable_mosaic.version = 11 : i64} {
  func.func @kernel(%arg0: i32, %arg1: i32, %arg2: memref<1x16x1024xbf16, #tpu.memory_space<vmem>>, %arg3: memref<16x16xbf16, #tpu.memory_space<vmem>>, %arg4: memref<32x16xbf16, #tpu.memory_space<vmem>>, %arg5: memref<16x1xf32, #tpu.memory_space<vmem>>, %arg6: memref<32x1xf32, #tpu.memory_space<vmem>>, %arg7: memref<1x32x128xf32, #tpu.memory_space<vmem>>) attributes {dimension_semantics = [#tpu.dimension_semantics<parallel>, #tpu.dimension_semantics<arbitrary>], iteration_bounds = array<i64: 2, 1>, scalar_prefetch = 0 : i64, scratch_operands = 0 : i64, tpu.core_type = #tpu.core_type<tc>, window_params = [{transform_indices = @transform_0, window_bounds = array<i64: 1, 16, 1024>}, {pipeline_mode = #tpu.pipeline_mode<synchronous>, transform_indices = @transform_1, window_bounds = array<i64: 16, 16>}, {pipeline_mode = #tpu.pipeline_mode<synchronous>, transform_indices = @transform_2, window_bounds = array<i64: 32, 16>}, {pipeline_mode = #tpu.pipeline_mode<synchronous>, transform_indices = @transform_3, window_bounds = array<i64: 16, 1>}, {pipeline_mode = #tpu.pipeline_mode<synchronous>, transform_indices = @transform_4, window_bounds = array<i64: 32, 1>}, {transform_indices = @transform_5, window_bounds = array<i64: 1, 32, 128>}]} {
    %c0 = arith.constant 0 : index
    %c0_0 = arith.constant 0 : index
    %c0_1 = arith.constant 0 : index
    %0 = vector.load %arg2[%c0, %c0_0, %c0_1] : memref<1x16x1024xbf16, #tpu.memory_space<vmem>>, vector<1x16x1024xbf16>
    %1 = vector.shape_cast %0 : vector<1x16x1024xbf16> to vector<16x1024xbf16>
    %c0_2 = arith.constant 0 : index
    %c0_3 = arith.constant 0 : index
    %2 = vector.load %arg3[%c0_2, %c0_3] : memref<16x16xbf16, #tpu.memory_space<vmem>>, vector<16x16xbf16>
    %cst = arith.constant dense<0.000000e+00> : vector<16x1024xf32>
    %3 = tpu.matmul %2, %1, %cst {dimension_numbers = #tpu.dot_dimension_numbers<[1], [0], [0], [1], [0, 0, 1, 1], [], []>} : vector<16x16xbf16>, vector<16x1024xbf16>, vector<16x1024xf32> -> vector<16x1024xf32>
    %c0_4 = arith.constant 0 : index
    %c0_5 = arith.constant 0 : index
    %4 = vector.load %arg5[%c0_4, %c0_5] : memref<16x1xf32, #tpu.memory_space<vmem>>, vector<16x1xf32>
    %5 = vector.broadcast %4 : vector<16x1xf32> to vector<16x1024xf32>
    %6 = arith.addf %3, %5 : vector<16x1024xf32>
    %cst_6 = arith.constant 0.000000e+00 : f32
    %7 = vector.broadcast %cst_6 : f32 to vector<16x1024xf32>
    %8 = arith.maximumf %6, %7 : vector<16x1024xf32>
    %9 = arith.truncf %8 : vector<16x1024xf32> to vector<16x1024xbf16>
    %c0_7 = arith.constant 0 : index
    %c0_8 = arith.constant 0 : index
    %10 = vector.load %arg4[%c0_7, %c0_8] : memref<32x16xbf16, #tpu.memory_space<vmem>>, vector<32x16xbf16>
    %cst_9 = arith.constant dense<0.000000e+00> : vector<32x1024xf32>
    %11 = tpu.matmul %10, %9, %cst_9 {dimension_numbers = #tpu.dot_dimension_numbers<[1], [0], [0], [1], [0, 0, 1, 1], [], []>} : vector<32x16xbf16>, vector<16x1024xbf16>, vector<32x1024xf32> -> vector<32x1024xf32>
    %12 = vector.extract_strided_slice %11 {offsets = [0, 0], sizes = [32, 128], strides = [1, 1]} : vector<32x1024xf32> to vector<32x128xf32>
    %13 = vector.extract_strided_slice %11 {offsets = [0, 128], sizes = [32, 128], strides = [1, 1]} : vector<32x1024xf32> to vector<32x128xf32>
    %14 = vector.extract_strided_slice %11 {offsets = [0, 256], sizes = [32, 128], strides = [1, 1]} : vector<32x1024xf32> to vector<32x128xf32>
    %15 = vector.extract_strided_slice %11 {offsets = [0, 384], sizes = [32, 128], strides = [1, 1]} : vector<32x1024xf32> to vector<32x128xf32>
    %16 = vector.extract_strided_slice %11 {offsets = [0, 512], sizes = [32, 128], strides = [1, 1]} : vector<32x1024xf32> to vector<32x128xf32>
    %17 = vector.extract_strided_slice %11 {offsets = [0, 640], sizes = [32, 128], strides = [1, 1]} : vector<32x1024xf32> to vector<32x128xf32>
    %18 = vector.extract_strided_slice %11 {offsets = [0, 768], sizes = [32, 128], strides = [1, 1]} : vector<32x1024xf32> to vector<32x128xf32>
    %19 = vector.extract_strided_slice %11 {offsets = [0, 896], sizes = [32, 128], strides = [1, 1]} : vector<32x1024xf32> to vector<32x128xf32>
    %20 = arith.maximumf %12, %13 : vector<32x128xf32>
    %21 = arith.maximumf %14, %15 : vector<32x128xf32>
    %22 = arith.maximumf %16, %17 : vector<32x128xf32>
    %23 = arith.maximumf %18, %19 : vector<32x128xf32>
    %24 = arith.maximumf %20, %21 : vector<32x128xf32>
    %25 = arith.maximumf %22, %23 : vector<32x128xf32>
    %26 = arith.maximumf %24, %25 : vector<32x128xf32>
    %c0_i32 = arith.constant 0 : i32
    %27 = arith.cmpi eq, %arg1, %c0_i32 : i32
    %28 = arith.extui %27 : i1 to i32
    %c0_i32_10 = arith.constant 0 : i32
    %29 = arith.cmpi ne, %28, %c0_i32_10 : i32
    scf.if %29 {
      %c0_15 = arith.constant 0 : index
      %c0_16 = arith.constant 0 : index
      %c0_17 = arith.constant 0 : index
      %36 = vector.load %arg7[%c0_15, %c0_16, %c0_17] : memref<1x32x128xf32, #tpu.memory_space<vmem>>, vector<1x32x128xf32>
      %37 = vector.shape_cast %36 : vector<1x32x128xf32> to vector<32x128xf32>
      %38 = vector.shape_cast %26 : vector<32x128xf32> to vector<1x32x128xf32>
      tpu.vector_store %arg7[%c0_15, %c0_16, %c0_17], %38 {strides = array<i32>} : memref<1x32x128xf32, #tpu.memory_space<vmem>>, vector<1x32x128xf32>,
    } else {
    }
    %c0_i32_11 = arith.constant 0 : i32
    %30 = arith.cmpi sgt, %arg1, %c0_i32_11 : i32
    %31 = arith.extui %30 : i1 to i32
    %c0_i32_12 = arith.constant 0 : i32
    %32 = arith.cmpi ne, %31, %c0_i32_12 : i32
    scf.if %32 {
      %c0_15 = arith.constant 0 : index
      %c0_16 = arith.constant 0 : index
      %c0_17 = arith.constant 0 : index
      %36 = vector.load %arg7[%c0_15, %c0_16, %c0_17] : memref<1x32x128xf32, #tpu.memory_space<vmem>>, vector<1x32x128xf32>
      %37 = vector.shape_cast %36 : vector<1x32x128xf32> to vector<32x128xf32>
      %38 = arith.maximumf %37, %26 : vector<32x128xf32>
      %c0_18 = arith.constant 0 : index
      %c0_19 = arith.constant 0 : index
      %c0_20 = arith.constant 0 : index
      %39 = vector.load %arg7[%c0_18, %c0_19, %c0_20] : memref<1x32x128xf32, #tpu.memory_space<vmem>>, vector<1x32x128xf32>
      %40 = vector.shape_cast %39 : vector<1x32x128xf32> to vector<32x128xf32>
      %41 = vector.shape_cast %38 : vector<32x128xf32> to vector<1x32x128xf32>
      tpu.vector_store %arg7[%c0_18, %c0_19, %c0_20], %41 {strides = array<i32>} : memref<1x32x128xf32, #tpu.memory_space<vmem>>, vector<1x32x128xf32>,
    } else {
    }
    %c0_i32_13 = arith.constant 0 : i32
    %33 = arith.cmpi eq, %arg1, %c0_i32_13 : i32
    %34 = arith.extui %33 : i1 to i32
    %c0_i32_14 = arith.constant 0 : i32
    %35 = arith.cmpi ne, %34, %c0_i32_14 : i32
    scf.if %35 {
      %c0_15 = arith.constant 0 : index
      %c0_16 = arith.constant 0 : index
      %c0_17 = arith.constant 0 : index
      %36 = vector.load %arg7[%c0_15, %c0_16, %c0_17] : memref<1x32x128xf32, #tpu.memory_space<vmem>>, vector<1x32x128xf32>
      %37 = vector.shape_cast %36 : vector<1x32x128xf32> to vector<32x128xf32>
      %c0_18 = arith.constant 0 : index
      %c0_19 = arith.constant 0 : index
      %38 = vector.load %arg6[%c0_18, %c0_19] : memref<32x1xf32, #tpu.memory_space<vmem>>, vector<32x1xf32>
      %39 = vector.broadcast %38 : vector<32x1xf32> to vector<32x128xf32>
      %40 = arith.addf %37, %39 : vector<32x128xf32>
      %cst_20 = arith.constant 0.000000e+00 : f32
      %41 = vector.broadcast %cst_20 : f32 to vector<32x128xf32>
      %42 = arith.maximumf %40, %41 : vector<32x128xf32>
      %c0_21 = arith.constant 0 : index
      %c0_22 = arith.constant 0 : index
      %c0_23 = arith.constant 0 : index
      %43 = vector.load %arg7[%c0_21, %c0_22, %c0_23] : memref<1x32x128xf32, #tpu.memory_space<vmem>>, vector<1x32x128xf32>
      %44 = vector.shape_cast %43 : vector<1x32x128xf32> to vector<32x128xf32>
      %45 = vector.shape_cast %42 : vector<32x128xf32> to vector<1x32x128xf32>
      tpu.vector_store %arg7[%c0_21, %c0_22, %c0_23], %45 {strides = array<i32>} : memref<1x32x128xf32, #tpu.memory_space<vmem>>, vector<1x32x128xf32>,
    } else {
    }
    return
  }
  func.func @transform_0(%arg0: i32, %arg1: i32) -> (i32, i32, i32) {
    %c0_i32 = arith.constant 0 : i32
    %c0_i32_0 = arith.constant 0 : i32
    return %arg0, %c0_i32, %arg1 : i32, i32, i32
  }
  func.func @transform_1(%arg0: i32, %arg1: i32) -> (i32, i32) {
    %c0_i32 = arith.constant 0 : i32
    %c0_i32_0 = arith.constant 0 : i32
    %c0_i32_1 = arith.constant 0 : i32
    return %c0_i32, %c0_i32_0 : i32, i32
  }
  func.func @transform_2(%arg0: i32, %arg1: i32) -> (i32, i32) {
    %c0_i32 = arith.constant 0 : i32
    %c0_i32_0 = arith.constant 0 : i32
    %c0_i32_1 = arith.constant 0 : i32
    return %c0_i32, %c0_i32_0 : i32, i32
  }
  func.func @transform_3(%arg0: i32, %arg1: i32) -> (i32, i32) {
    %c0_i32 = arith.constant 0 : i32
    %c0_i32_0 = arith.constant 0 : i32
    %c0_i32_1 = arith.constant 0 : i32
    return %c0_i32, %c0_i32_0 : i32, i32
  }
  func.func @transform_4(%arg0: i32, %arg1: i32) -> (i32, i32) {
    %c0_i32 = arith.constant 0 : i32
    %c0_i32_0 = arith.constant 0 : i32
    %c0_i32_1 = arith.constant 0 : i32
    return %c0_i32, %c0_i32_0 : i32, i32
  }
  func.func @transform_5(%arg0: i32, %arg1: i32) -> (i32, i32, i32) {
    %c0_i32 = arith.constant 0 : i32
    %c0_i32_0 = arith.constant 0 : i32
    %c0_i32_1 = arith.constant 0 : i32
    return %arg0, %c0_i32, %c0_i32_0 : i32, i32, i32
  }
}

module attributes {stable_mosaic.version = 11 : i64} {
  func.func @kernel(%arg0: i32, %arg1: i32, %arg2: memref<1x16x2048xbf16, #tpu.memory_space<vmem>>, %arg3: memref<16x16xbf16, #tpu.memory_space<vmem>>, %arg4: memref<32x16xbf16, #tpu.memory_space<vmem>>, %arg5: memref<16x1xf32, #tpu.memory_space<vmem>>, %arg6: memref<32x1xf32, #tpu.memory_space<vmem>>, %arg7: memref<1x32x128xf32, #tpu.memory_space<vmem>>) attributes {dimension_semantics = [#tpu.dimension_semantics<parallel>, #tpu.dimension_semantics<arbitrary>], iteration_bounds = array<i64: 2, 1>, scalar_prefetch = 0 : i64, scratch_operands = 0 : i64, tpu.core_type = #tpu.core_type<tc>, window_params = [{transform_indices = @transform_0, window_bounds = array<i64: 1, 16, 2048>}, {pipeline_mode = #tpu.pipeline_mode<synchronous>, transform_indices = @transform_1, window_bounds = array<i64: 16, 16>}, {pipeline_mode = #tpu.pipeline_mode<synchronous>, transform_indices = @transform_2, window_bounds = array<i64: 32, 16>}, {pipeline_mode = #tpu.pipeline_mode<synchronous>, transform_indices = @transform_3, window_bounds = array<i64: 16, 1>}, {pipeline_mode = #tpu.pipeline_mode<synchronous>, transform_indices = @transform_4, window_bounds = array<i64: 32, 1>}, {transform_indices = @transform_5, window_bounds = array<i64: 1, 32, 128>}]} {
    %c0 = arith.constant 0 : index
    %c0_0 = arith.constant 0 : index
    %c0_1 = arith.constant 0 : index
    %0 = vector.load %arg2[%c0, %c0_0, %c0_1] : memref<1x16x2048xbf16, #tpu.memory_space<vmem>>, vector<1x16x2048xbf16>
    %1 = vector.shape_cast %0 : vector<1x16x2048xbf16> to vector<16x2048xbf16>
    %c0_2 = arith.constant 0 : index
    %c0_3 = arith.constant 0 : index
    %2 = vector.load %arg3[%c0_2, %c0_3] : memref<16x16xbf16, #tpu.memory_space<vmem>>, vector<16x16xbf16>
    %cst = arith.constant dense<0.000000e+00> : vector<16x2048xf32>
    %3 = tpu.matmul %2, %1, %cst {dimension_numbers = #tpu.dot_dimension_numbers<[1], [0], [0], [1], [0, 0, 1, 1], [], []>} : vector<16x16xbf16>, vector<16x2048xbf16>, vector<16x2048xf32> -> vector<16x2048xf32>
    %c0_4 = arith.constant 0 : index
    %c0_5 = arith.constant 0 : index
    %4 = vector.load %arg5[%c0_4, %c0_5] : memref<16x1xf32, #tpu.memory_space<vmem>>, vector<16x1xf32>
    %5 = vector.broadcast %4 : vector<16x1xf32> to vector<16x2048xf32>
    %6 = arith.addf %3, %5 : vector<16x2048xf32>
    %cst_6 = arith.constant 0.000000e+00 : f32
    %7 = vector.broadcast %cst_6 : f32 to vector<16x2048xf32>
    %8 = arith.maximumf %6, %7 : vector<16x2048xf32>
    %9 = arith.truncf %8 : vector<16x2048xf32> to vector<16x2048xbf16>
    %c0_7 = arith.constant 0 : index
    %c0_8 = arith.constant 0 : index
    %10 = vector.load %arg4[%c0_7, %c0_8] : memref<32x16xbf16, #tpu.memory_space<vmem>>, vector<32x16xbf16>
    %cst_9 = arith.constant dense<0.000000e+00> : vector<32x2048xf32>
    %11 = tpu.matmul %10, %9, %cst_9 {dimension_numbers = #tpu.dot_dimension_numbers<[1], [0], [0], [1], [0, 0, 1, 1], [], []>} : vector<32x16xbf16>, vector<16x2048xbf16>, vector<32x2048xf32> -> vector<32x2048xf32>
    %12 = vector.extract_strided_slice %11 {offsets = [0, 0], sizes = [32, 128], strides = [1, 1]} : vector<32x2048xf32> to vector<32x128xf32>
    %13 = vector.extract_strided_slice %11 {offsets = [0, 128], sizes = [32, 128], strides = [1, 1]} : vector<32x2048xf32> to vector<32x128xf32>
    %14 = vector.extract_strided_slice %11 {offsets = [0, 256], sizes = [32, 128], strides = [1, 1]} : vector<32x2048xf32> to vector<32x128xf32>
    %15 = vector.extract_strided_slice %11 {offsets = [0, 384], sizes = [32, 128], strides = [1, 1]} : vector<32x2048xf32> to vector<32x128xf32>
    %16 = vector.extract_strided_slice %11 {offsets = [0, 512], sizes = [32, 128], strides = [1, 1]} : vector<32x2048xf32> to vector<32x128xf32>
    %17 = vector.extract_strided_slice %11 {offsets = [0, 640], sizes = [32, 128], strides = [1, 1]} : vector<32x2048xf32> to vector<32x128xf32>
    %18 = vector.extract_strided_slice %11 {offsets = [0, 768], sizes = [32, 128], strides = [1, 1]} : vector<32x2048xf32> to vector<32x128xf32>
    %19 = vector.extract_strided_slice %11 {offsets = [0, 896], sizes = [32, 128], strides = [1, 1]} : vector<32x2048xf32> to vector<32x128xf32>
    %20 = vector.extract_strided_slice %11 {offsets = [0, 1024], sizes = [32, 128], strides = [1, 1]} : vector<32x2048xf32> to vector<32x128xf32>
    %21 = vector.extract_strided_slice %11 {offsets = [0, 1152], sizes = [32, 128], strides = [1, 1]} : vector<32x2048xf32> to vector<32x128xf32>
    %22 = vector.extract_strided_slice %11 {offsets = [0, 1280], sizes = [32, 128], strides = [1, 1]} : vector<32x2048xf32> to vector<32x128xf32>
    %23 = vector.extract_strided_slice %11 {offsets = [0, 1408], sizes = [32, 128], strides = [1, 1]} : vector<32x2048xf32> to vector<32x128xf32>
    %24 = vector.extract_strided_slice %11 {offsets = [0, 1536], sizes = [32, 128], strides = [1, 1]} : vector<32x2048xf32> to vector<32x128xf32>
    %25 = vector.extract_strided_slice %11 {offsets = [0, 1664], sizes = [32, 128], strides = [1, 1]} : vector<32x2048xf32> to vector<32x128xf32>
    %26 = vector.extract_strided_slice %11 {offsets = [0, 1792], sizes = [32, 128], strides = [1, 1]} : vector<32x2048xf32> to vector<32x128xf32>
    %27 = vector.extract_strided_slice %11 {offsets = [0, 1920], sizes = [32, 128], strides = [1, 1]} : vector<32x2048xf32> to vector<32x128xf32>
    %28 = arith.maximumf %12, %13 : vector<32x128xf32>
    %29 = arith.maximumf %14, %15 : vector<32x128xf32>
    %30 = arith.maximumf %16, %17 : vector<32x128xf32>
    %31 = arith.maximumf %18, %19 : vector<32x128xf32>
    %32 = arith.maximumf %20, %21 : vector<32x128xf32>
    %33 = arith.maximumf %22, %23 : vector<32x128xf32>
    %34 = arith.maximumf %24, %25 : vector<32x128xf32>
    %35 = arith.maximumf %26, %27 : vector<32x128xf32>
    %36 = arith.maximumf %28, %29 : vector<32x128xf32>
    %37 = arith.maximumf %30, %31 : vector<32x128xf32>
    %38 = arith.maximumf %32, %33 : vector<32x128xf32>
    %39 = arith.maximumf %34, %35 : vector<32x128xf32>
    %40 = arith.maximumf %36, %37 : vector<32x128xf32>
    %41 = arith.maximumf %38, %39 : vector<32x128xf32>
    %42 = arith.maximumf %40, %41 : vector<32x128xf32>
    %c0_i32 = arith.constant 0 : i32
    %43 = arith.cmpi eq, %arg1, %c0_i32 : i32
    %44 = arith.extui %43 : i1 to i32
    %c0_i32_10 = arith.constant 0 : i32
    %45 = arith.cmpi ne, %44, %c0_i32_10 : i32
    scf.if %45 {
      %c0_15 = arith.constant 0 : index
      %c0_16 = arith.constant 0 : index
      %c0_17 = arith.constant 0 : index
      %52 = vector.load %arg7[%c0_15, %c0_16, %c0_17] : memref<1x32x128xf32, #tpu.memory_space<vmem>>, vector<1x32x128xf32>
      %53 = vector.shape_cast %52 : vector<1x32x128xf32> to vector<32x128xf32>
      %54 = vector.shape_cast %42 : vector<32x128xf32> to vector<1x32x128xf32>
      tpu.vector_store %arg7[%c0_15, %c0_16, %c0_17], %54 {strides = array<i32>} : memref<1x32x128xf32, #tpu.memory_space<vmem>>, vector<1x32x128xf32>,
    } else {
    }
    %c0_i32_11 = arith.constant 0 : i32
    %46 = arith.cmpi sgt, %arg1, %c0_i32_11 : i32
    %47 = arith.extui %46 : i1 to i32
    %c0_i32_12 = arith.constant 0 : i32
    %48 = arith.cmpi ne, %47, %c0_i32_12 : i32
    scf.if %48 {
      %c0_15 = arith.constant 0 : index
      %c0_16 = arith.constant 0 : index
      %c0_17 = arith.constant 0 : index
      %52 = vector.load %arg7[%c0_15, %c0_16, %c0_17] : memref<1x32x128xf32, #tpu.memory_space<vmem>>, vector<1x32x128xf32>
      %53 = vector.shape_cast %52 : vector<1x32x128xf32> to vector<32x128xf32>
      %54 = arith.maximumf %53, %42 : vector<32x128xf32>
      %c0_18 = arith.constant 0 : index
      %c0_19 = arith.constant 0 : index
      %c0_20 = arith.constant 0 : index
      %55 = vector.load %arg7[%c0_18, %c0_19, %c0_20] : memref<1x32x128xf32, #tpu.memory_space<vmem>>, vector<1x32x128xf32>
      %56 = vector.shape_cast %55 : vector<1x32x128xf32> to vector<32x128xf32>
      %57 = vector.shape_cast %54 : vector<32x128xf32> to vector<1x32x128xf32>
      tpu.vector_store %arg7[%c0_18, %c0_19, %c0_20], %57 {strides = array<i32>} : memref<1x32x128xf32, #tpu.memory_space<vmem>>, vector<1x32x128xf32>,
    } else {
    }
    %c0_i32_13 = arith.constant 0 : i32
    %49 = arith.cmpi eq, %arg1, %c0_i32_13 : i32
    %50 = arith.extui %49 : i1 to i32
    %c0_i32_14 = arith.constant 0 : i32
    %51 = arith.cmpi ne, %50, %c0_i32_14 : i32
    scf.if %51 {
      %c0_15 = arith.constant 0 : index
      %c0_16 = arith.constant 0 : index
      %c0_17 = arith.constant 0 : index
      %52 = vector.load %arg7[%c0_15, %c0_16, %c0_17] : memref<1x32x128xf32, #tpu.memory_space<vmem>>, vector<1x32x128xf32>
      %53 = vector.shape_cast %52 : vector<1x32x128xf32> to vector<32x128xf32>
      %c0_18 = arith.constant 0 : index
      %c0_19 = arith.constant 0 : index
      %54 = vector.load %arg6[%c0_18, %c0_19] : memref<32x1xf32, #tpu.memory_space<vmem>>, vector<32x1xf32>
      %55 = vector.broadcast %54 : vector<32x1xf32> to vector<32x128xf32>
      %56 = arith.addf %53, %55 : vector<32x128xf32>
      %cst_20 = arith.constant 0.000000e+00 : f32
      %57 = vector.broadcast %cst_20 : f32 to vector<32x128xf32>
      %58 = arith.maximumf %56, %57 : vector<32x128xf32>
      %c0_21 = arith.constant 0 : index
      %c0_22 = arith.constant 0 : index
      %c0_23 = arith.constant 0 : index
      %59 = vector.load %arg7[%c0_21, %c0_22, %c0_23] : memref<1x32x128xf32, #tpu.memory_space<vmem>>, vector<1x32x128xf32>
      %60 = vector.shape_cast %59 : vector<1x32x128xf32> to vector<32x128xf32>
      %61 = vector.shape_cast %58 : vector<32x128xf32> to vector<1x32x128xf32>
      tpu.vector_store %arg7[%c0_21, %c0_22, %c0_23], %61 {strides = array<i32>} : memref<1x32x128xf32, #tpu.memory_space<vmem>>, vector<1x32x128xf32>,
    } else {
    }
    return
  }
  func.func @transform_0(%arg0: i32, %arg1: i32) -> (i32, i32, i32) {
    %c0_i32 = arith.constant 0 : i32
    %c0_i32_0 = arith.constant 0 : i32
    return %arg0, %c0_i32, %arg1 : i32, i32, i32
  }
  func.func @transform_1(%arg0: i32, %arg1: i32) -> (i32, i32) {
    %c0_i32 = arith.constant 0 : i32
    %c0_i32_0 = arith.constant 0 : i32
    %c0_i32_1 = arith.constant 0 : i32
    return %c0_i32, %c0_i32_0 : i32, i32
  }
  func.func @transform_2(%arg0: i32, %arg1: i32) -> (i32, i32) {
    %c0_i32 = arith.constant 0 : i32
    %c0_i32_0 = arith.constant 0 : i32
    %c0_i32_1 = arith.constant 0 : i32
    return %c0_i32, %c0_i32_0 : i32, i32
  }
  func.func @transform_3(%arg0: i32, %arg1: i32) -> (i32, i32) {
    %c0_i32 = arith.constant 0 : i32
    %c0_i32_0 = arith.constant 0 : i32
    %c0_i32_1 = arith.constant 0 : i32
    return %c0_i32, %c0_i32_0 : i32, i32
  }
  func.func @transform_4(%arg0: i32, %arg1: i32) -> (i32, i32) {
    %c0_i32 = arith.constant 0 : i32
    %c0_i32_0 = arith.constant 0 : i32
    %c0_i32_1 = arith.constant 0 : i32
    return %c0_i32, %c0_i32_0 : i32, i32
  }
  func.func @transform_5(%arg0: i32, %arg1: i32) -> (i32, i32, i32) {
    %c0_i32 = arith.constant 0 : i32
    %c0_i32_0 = arith.constant 0 : i32
    %c0_i32_1 = arith.constant 0 : i32
    return %arg0, %c0_i32, %c0_i32_0 : i32, i32, i32
  }
}

</mosaic_0001>

<bundles_post_ra>
// kernel: custom-call.18
= control target key start
LH: loop header
LB: loop body
LE: loop exit
PB: predicated region body
PF: predicated region fallthrough
CT: control target
= control target key end

     0   :  { %s6_s0 = inlined_call_operand.vmem [shape: f32[2,64], index: 0, kind: output, shape index: {}]  }

// kernel: _lambda_.3
= control target key start
LH: loop header
LB: loop body
LE: loop exit
PB: predicated region body
PF: predicated region fallthrough
CT: control target
= control target key end

     0   :  { %s431_s9 = smov 0   ;;  %s433_s10 = smov 0   ;;  %s475_s0 = inlined_call_operand.vmem [shape: f32[2,16,3], index: 0, kind: input, shape index: {}]   ;;  %s476_s1 = inlined_call_operand.vmem [shape: f32[2,3,64], index: 1, kind: input, shape index: {}]   ;;  %s477_s2 = inlined_call_operand.vmem [shape: f32[2,16,64], index: 2, kind: output, shape index: {}]  }
   0x1   :  { %s435_s11 = smov 0  }
   0x2 LB: > { %s24_s12 = sadd.s32 1, %s407_s10  ;;  %p348_p0 = scmp.ge.s32.totalorder %s411_s11, 1  ;;  %s411_s11 = sphi %s435_s11, %s12_s11   ;;  %s407_s10 = sphi %s433_s10, %s479_s10   ;;  %s403_s9 = sphi %s431_s9, %s478_s9  }
   0x3   : > { %p26_p1 = scmp.ge.s32.totalorder %s24_s12, 2  ;;  %p140_p2 = scmp.lt.s32.totalorder %s411_s11, 3 }
   0x5   : > { %s481_s12 = smov (%p26_p1, %s24_s12), 0  ;;  %p141_p3 = pnand %p348_p0, %p140_p2 }
   0x6   : > { %p172_p4 = scmp.lt.s32.totalorder (!%p141_p3), %s403_s9, 1  ;;  %v413_v0 = vmov (!%p141_p3), 1   ;;  %v414_v1 = vmov (!%p141_p3), 0   ;;  %v415_v4 = vmov (!%p141_p3), 2   ;;  %v205_v5 = vlaneseq (!%p141_p3) }
   0x7   : > { %144 = sbr.rel (%p141_p3) target bundleno = 162 (0xa2), region = 28  ;;  %386 = vset.pattern.permute.xlu1 (!%p141_p3), %v413_v0  ;;  %385 = vset.pattern.permute.xlu0 (!%p141_p3), %v414_v1  ;;  %vm249_vm0 = vcmask (!%p141_p3), 523264  }
   0x8   : > { %v206_v6 = vshrl.u32 (!%p141_p3), %v205_v5, 7 }
   0xa   : > { %v223_v7 = vsub.s32 (!%p141_p3), 1, %v206_v6  ;;  %v207_v8 = vsub.s32 (!%p141_p3), 0, %v206_v6  ;;  %v241_v14 = vsub.s32 (!%p141_p3), 2, %v206_v6 }
   0xe   : > { %s483_s9 = smov (!%p172_p4, %s403_s9), 1 }
   0xf   : > { %s356_s13 = sshll.u32 %s483_s9, 4  ;;  %s351_s17 = sshll.u32 %s483_s9, 2 }
  0x10   : > { %s176_s16 = scalar_lea.vmem %s475_s0, %s356_s13  ;;  %s183_s20 = scalar_lea.vmem %s476_s1, %s351_s17 }
  0x11   : > { %v192_v2 = vld [vmem:[%s176_s16] sm:$0xff]  ;;  %v193_v3 = vld [vmem:[%s176_s16 + $0x8] sm:$0xff]  ;;  %s191_s23 = scalar_lea.vmem %s477_s2, %s356_s13 }
  0x12   : > { %214 = vperm.xlu1 %386, %v192_v2   ;;  %197 = vperm.xlu0 %385, %v192_v2   ;;  %v194_v9 = vld [vmem:[%s183_s20] sm:$0x7] }
  0x13   : > { %v224_v10 = vrot.slane %v194_v9, %v223_v7  ;;  %v208_v12 = vrot.slane %v194_v9, %v207_v8  ;;  %v242_v21 = vrot.slane %v194_v9, %v241_v14 }
  0x16   : > { %218 = vperm.xlu1 %386, %v193_v3   ;;  %202 = vperm.xlu0 %385, %v193_v3  }
  0x1a   : > { %388 = vset.pattern.permute.xlu1 %v415_v4  ;;  %387 = vset.pattern.permute.xlu0 %v415_v4 }
  0x1b   : > { %236 = vperm.xlu1 %388, %v193_v3   ;;  %232 = vperm.xlu0 %387, %v192_v2  }
  0x91   : > { %v215_v11 = vpop.permute.xlu1 %214  ;;  %v198_v13 = vpop.permute.xlu0 %197 }
  0x92   : > { %v225_v15 = vsub.f32 %v215_v11, %v224_v10  ;;  %v209_v16 = vsub.f32 %v198_v13, %v208_v12 }
  0x94   : > { %v227_v22 = vmul.f32 %v225_v15, %v225_v15  ;;  %v211_v23 = vmul.f32 %v209_v16, %v209_v16 }
  0x95   : > { %v219_v17 = vpop.permute.xlu1 %218  ;;  %v203_v18 = vpop.permute.xlu0 %202 }
  0x96   : > { %v226_v19 = vsub.f32 %v219_v17, %v224_v10  ;;  %v210_v20 = vsub.f32 %v203_v18, %v208_v12  ;;  %v229_v30 = vadd.f32 %v227_v22, %v211_v23 }
  0x98   : > { %v228_v24 = vmul.f32 %v226_v19, %v226_v19  ;;  %v212_v25 = vmul.f32 %v210_v20, %v210_v20 }
  0x9a   : > { %v237_v26 = vpop.permute.xlu1 %236  ;;  %v233_v27 = vpop.permute.xlu0 %232  ;;  %v230_v31 = vadd.f32 %v228_v24, %v212_v25 }
  0x9b   : > { %v244_v28 = vsub.f32 %v237_v26, %v242_v21  ;;  %v243_v29 = vsub.f32 %v233_v27, %v242_v21 }
  0x9d   : > { %v246_v32 = vmul.f32 %v244_v28, %v244_v28  ;;  %v245_v33 = vmul.f32 %v243_v29, %v243_v29 }
  0x9f   : > { %v248_v34 = vadd.f32 %v246_v32, %v230_v31  ;;  %v247_v35 = vadd.f32 %v245_v33, %v229_v30 }
  0xa1   : > { %251 = vst.msk [vmem:[%s191_s23 + $0x8] sm:$0xff] %vm249_vm0, %v248_v34  ;;  %250 = vst.msk [vmem:[%s191_s23] sm:$0xff] %vm249_vm0, %v247_v35 }
  0xa2 PF: > { %s12_s11 = sadd.s32 1, %s411_s11   ;;  %s478_s9 = smov %s407_s10 }
  0xa3   : > { %p9_p5 = scmp.ge.s32.totalorder %s12_s11, 4   ;;  %s479_s10 = smov %s481_s12 }
  0xa5   :  { %11 = sbr.rel (!%p9_p5) target bundleno = 2 (0x2), region = 61 }

// kernel: _lambda_.4
= control target key start
LH: loop header
LB: loop body
LE: loop exit
PB: predicated region body
PF: predicated region fallthrough
CT: control target
= control target key end

     0   :  { %s1038_s18 = smov 0   ;;  %s1040_s19 = smov 0   ;;  %s1128_s0 = inlined_call_operand.vmem [shape: bf16[2,16,1024], index: 0, kind: input, shape index: {}]   ;;  %s1129_s1 = inlined_call_operand.vmem [shape: bf16[16,16], index: 1, kind: input, shape index: {}]   ;;  %s1130_s2 = inlined_call_operand.vmem [shape: bf16[32,16], index: 2, kind: input, shape index: {}]   ;;  %s1131_s3 = inlined_call_operand.vmem [shape: f32[16,1], index: 3, kind: input, shape index: {}]   ;;  %s1132_s4 = inlined_call_operand.vmem [shape: f32[32,1], index: 4, kind: input, shape index: {}]   ;;  %s1133_s5 = inlined_call_operand.vmem [shape: f32[2,32,128], index: 5, kind: output, shape index: {}]  }
   0x1   :  { %s1042_s20 = smov 0  }
   0x2 LB: > { %s27_s21 = sadd.s32 1, %s1001_s19  ;;  %p921_p0 = scmp.ge.s32.totalorder %s1005_s20, 1  ;;  %s1005_s20 = sphi %s1042_s20, %s15_s20   ;;  %s1001_s19 = sphi %s1040_s19, %s1135_s19   ;;  %s997_s18 = sphi %s1038_s18, %s1134_s18  }
   0x3   : > { %p29_p1 = scmp.ge.s32.totalorder %s27_s21, 2  ;;  %p206_p2 = scmp.lt.s32.totalorder %s1005_s20, 3 }
   0x5   : > { %s1137_s21 = smov (%p29_p1, %s27_s21), 0  ;;  %p207_p3 = pnand %p921_p0, %p206_p2 }
   0x6   : > { %p239_p4 = scmp.lt.s32.totalorder (!%p207_p3), %s997_s18, 1  ;;  %v1007_v0 = vmov (!%p207_p3), 0   ;;  %v264_v1 = vld [vmem:[%s1131_s3] sm:$0xff] (!%p207_p3)  ;;  %v265_v2 = vld [vmem:[%s1131_s3 + $0x8] sm:$0xff] (!%p207_p3)  ;;  %v814_v18 = vld [vmem:[%s1132_s4 + $0x10] sm:$0xff] (!%p207_p3)  ;;  %vm321_vm0 = vcmask (!%p207_p3), 130048  }
   0x7   : > { %210 = sbr.rel (%p207_p3) target bundleno = 500 (0x1f4), region = 40  ;;  %357 = vmatprep.mubr.bf16.mxu0 (!%p207_p3), %v1007_v0  ;;  %400 = vmatprep.mubr.bf16.mxu1 (!%p207_p3), %v1007_v0  ;;  %v980_v16 = vld [vmem:[%s1129_s1] sm:$0xff] (!%p207_p3)   ;;  %v813_v22 = vld [vmem:[%s1132_s4 + $0x8] sm:$0xff] (!%p207_p3)  ;;  %v815_v23 = vld [vmem:[%s1132_s4 + $0x18] sm:$0xff] (!%p207_p3) }
   0x8   : > { %978 = vset.pattern.permute.xlu0 (!%p207_p3), %v1007_v0  ;;  %979 = vset.pattern.permute.xlu1 (!%p207_p3), %v1007_v0  ;;  %v812_v21 = vld [vmem:[%s1132_s4] sm:$0xff] (!%p207_p3) }
   0x9   : > { %268 = vperm.xlu0 (!%p207_p3), %978, %v264_v1   ;;  %818 = vperm.xlu1 (!%p207_p3), %979, %v812_v21   ;;  %v981_v62 = vld [vmem:[%s1130_s2] sm:$0xff] (!%p207_p3)  }
   0xd   : > { %273 = vperm.xlu0 (!%p207_p3), %978, %v265_v2   ;;  %823 = vperm.xlu1 (!%p207_p3), %979, %v813_v22  }
   0xe   : > { %s1139_s18 = smov (!%p239_p4, %s997_s18), 1 }
   0xf   : > { %s951_s24 = sshll.u32 %s1139_s18, 6  ;;  %s952_s23 = sshll.u32 %s1139_s18, 5 }
  0x10   : > { %s246_s29 = scalar_lea.vmem %s1128_s0, %s951_s24  ;;  %s252_s26 = scalar_lea.vmem %s1133_s5, %s952_s23 }
  0x11   : > { %v254_v3 = vld [vmem:[%s246_s29] sm:$0xff]  ;;  %v255_v5 = vld [vmem:[%s246_s29 + $0x8] sm:$0xff]  ;;  %v256_v9 = vld [vmem:[%s246_s29 + $0x10] sm:$0xff]  ;;  %828 = vperm.xlu0 %978, %v814_v18   ;;  %833 = vperm.xlu1 %979, %v815_v23  }
  0x12   : > { %v258_v4 = vld [vmem:[%s246_s29 + $0x20] sm:$0xff]  ;;  %v259_v7 = vld [vmem:[%s246_s29 + $0x28] sm:$0xff]  ;;  %v260_v10 = vld [vmem:[%s246_s29 + $0x30] sm:$0xff] }
  0x13   : > { %v928_v6 = vcombine.high %v254_v3, %v258_v4  ;;  %v927_v8 = vcombine.low %v254_v3, %v258_v4  ;;  %v930_v11 = vcombine.high %v255_v5, %v259_v7  ;;  %v929_v12 = vcombine.low %v255_v5, %v259_v7  ;;  %v257_v14 = vld [vmem:[%s246_s29 + $0x18] sm:$0xff] }
  0x14   : > { %v932_v13 = vcombine.high %v256_v9, %v260_v10  ;;  %v261_v15 = vld [vmem:[%s246_s29 + $0x38] sm:$0xff]  ;;  %v931_v19 = vcombine.low %v256_v9, %v260_v10 }
  0x15   : > { %325 = vmatprep.subr.bf16.mxu0 %v928_v6  ;;  %v934_v17 = vcombine.high %v257_v14, %v261_v15  ;;  %368 = vmatprep.subr.bf16.mxu1 %v930_v11  ;;  %v933_v20 = vcombine.low %v257_v14, %v261_v15 }
  0x16   : > { %326 = vmatpush1.bf16.msra.mxu0 %v927_v8  ;;  %369 = vmatpush1.bf16.msra.mxu1 %v929_v12 }
  0x17   : > { %411 = vmatprep.subr.bf16.mxu0 %v932_v13  ;;  %454 = vmatprep.subr.bf16.mxu1 %v934_v17 }
  0x19   : > { %935 = vmatmul.mubr.msk.bf16.vlgmr.msra.gmra.mrb[0].mxu0 %vm321_vm0, %v980_v16  ;;  %936 = vmatmul.mubr.msk.bf16.vlgmr.msra.gmra.mrb[0].mxu1 %vm321_vm0, %v980_v16 }
  0x1a   : > { %412 = vmatpush1.bf16.msra.mxu0 %v931_v19  ;;  %455 = vmatpush1.bf16.msra.mxu1 %v933_v20  ;;  %v982_v20 = vld [vmem:[%s1130_s2 + $0x8] sm:$0xff]  }
  0x1b   : > { %443 = vmatprep.mubr.bf16.mxu0 %v1007_v0  ;;  %486 = vmatprep.mubr.bf16.mxu1 %v1007_v0 }
  0x21   : > { %937 = vmatmul.mubr.msk.bf16.vlgmr.msra.gmra.mrb[4].mxu0 %vm321_vm0, %v980_v16  ;;  %938 = vmatmul.mubr.msk.bf16.vlgmr.msra.gmra.mrb[4].mxu1 %vm321_vm0, %v980_v16 }
  0x22   : > { %573 = vmatprep.mubr.bf16.mxu0 %v1007_v0  ;;  %626 = vmatprep.mubr.bf16.mxu1 %v1007_v0 }
  0x88   : > { %v269_v24 = vpop.permute.xlu0 %268 }
  0x8c   : > { %v274_v25 = vpop.permute.xlu0 %273 }
  0xec   : > { %v359_v26 = vpop.f32.mrb[0].mxu0  ;;  %v402_v28 = vpop.f32.mrb[0].mxu1 }
  0xed   : > { %v360_v27 = vadd.f32 %v359_v26, %v269_v24  ;;  %v361_v29 = vpop.f32.mrb[1].mxu0  ;;  %v403_v30 = vadd.f32 %v402_v28, %v269_v24  ;;  %v404_v32 = vpop.f32.mrb[1].mxu1 }
  0xee   : > { %v362_v31 = vadd.f32 %v361_v29, %v269_v24  ;;  %v363_v33 = vpop.f32.mrb[2].mxu0  ;;  %v405_v34 = vadd.f32 %v404_v32, %v269_v24  ;;  %v406_v36 = vpop.f32.mrb[2].mxu1 }
  0xef   : > { %v364_v35 = vadd.f32 %v363_v33, %v274_v25  ;;  %v365_v37 = vpop.f32.mrb[3].mxu0  ;;  %v407_v38 = vadd.f32 %v406_v36, %v274_v25  ;;  %v408_v40 = vpop.f32.mrb[3].mxu1  ;;  %v497_v41 = vmax.f32 %v360_v27, 0.0  ;;  %v499_v44 = vmax.f32 %v403_v30, 0.0 }
  0xf0   : > { %v366_v39 = vadd.f32 %v365_v37, %v274_v25  ;;  %v409_v43 = vadd.f32 %v408_v40, %v274_v25  ;;  %v498_v45 = vmax.f32 %v362_v31, 0.0  ;;  %v500_v48 = vmax.f32 %v405_v34, 0.0 }
  0xf1   : > { %v505_v42 = vmax.f32 %v364_v35, 0.0  ;;  %v507_v46 = vmax.f32 %v407_v38, 0.0 }
  0xf2   : > { %v506_v47 = vmax.f32 %v366_v39, 0.0  ;;  %v508_v50 = vmax.f32 %v409_v43, 0.0 }
  0xf3   : > { %v513_v49 = vpack.c.bf16 %v505_v42, %v497_v41  ;;  %v515_v51 = vpack.c.bf16 %v507_v46, %v499_v44 }
  0xf4   : > { %v514_v52 = vpack.c.bf16 %v506_v47, %v498_v45  ;;  %v445_v53 = vpop.f32.mrb[4].mxu0  ;;  %v516_v54 = vpack.c.bf16 %v508_v50, %v500_v48  ;;  %v488_v56 = vpop.f32.mrb[4].mxu1 }
  0xf5   : > { %v446_v55 = vadd.f32 %v445_v53, %v269_v24  ;;  %v447_v57 = vpop.f32.mrb[5].mxu0  ;;  %v489_v58 = vadd.f32 %v488_v56, %v269_v24  ;;  %v490_v60 = vpop.f32.mrb[5].mxu1 }
  0xf6   : > { %v448_v59 = vadd.f32 %v447_v57, %v269_v24  ;;  %v449_v61 = vpop.f32.mrb[6].mxu0  ;;  %541 = vmatprep.subr.bf16.mxu0 %v514_v52  ;;  %v491_v63 = vadd.f32 %v490_v60, %v269_v24  ;;  %v492_v2 = vpop.f32.mrb[6].mxu1  ;;  %594 = vmatprep.subr.bf16.mxu1 %v516_v54 }
  0xf7   : > { %v450_v1 = vadd.f32 %v449_v61, %v274_v25  ;;  %v451_v3 = vpop.f32.mrb[7].mxu0  ;;  %542 = vmatpush1.bf16.msra.mxu0 %v513_v49  ;;  %v493_v4 = vadd.f32 %v492_v2, %v274_v25  ;;  %v494_v6 = vpop.f32.mrb[7].mxu1  ;;  %595 = vmatpush1.bf16.msra.mxu1 %v515_v51  ;;  %v501_v7 = vmax.f32 %v446_v55, 0.0  ;;  %v503_v10 = vmax.f32 %v489_v58, 0.0 }
  0xf8   : > { %v452_v5 = vadd.f32 %v451_v3, %v274_v25  ;;  %v495_v9 = vadd.f32 %v494_v6, %v274_v25  ;;  %v502_v11 = vmax.f32 %v448_v59, 0.0  ;;  %v504_v14 = vmax.f32 %v491_v63, 0.0  ;;  %v819_v49 = vpop.permute.xlu1 %818 }
  0xf9   : > { %v509_v8 = vmax.f32 %v450_v1, 0.0  ;;  %v511_v12 = vmax.f32 %v493_v4, 0.0 }
  0xfa   : > { %v510_v13 = vmax.f32 %v452_v5, 0.0  ;;  %941 = vmatmul.mubr.msk.bf16.vlgmr.msra.gmra.mrb[8].mxu0 %vm321_vm0, %v981_v62  ;;  %v512_v16 = vmax.f32 %v495_v9, 0.0  ;;  %943 = vmatmul.mubr.msk.bf16.vlgmr.msra.gmra.mrb[8].mxu1 %vm321_vm0, %v981_v62 }
  0xfb   : > { %v517_v15 = vpack.c.bf16 %v509_v8, %v501_v7  ;;  %583 = vmatprep.mubr.bf16.mxu0 %v1007_v0  ;;  %v519_v17 = vpack.c.bf16 %v511_v12, %v503_v10  ;;  %636 = vmatprep.mubr.bf16.mxu1 %v1007_v0 }
  0xfc   : > { %v518_v18 = vpack.c.bf16 %v510_v13, %v502_v11  ;;  %v520_v19 = vpack.c.bf16 %v512_v16, %v504_v14  ;;  %v824_v2 = vpop.permute.xlu1 %823 }
  0xfe   : > { %647 = vmatprep.subr.bf16.mxu0 %v518_v18  ;;  %700 = vmatprep.subr.bf16.mxu1 %v520_v19 }
  0xff   : > { %648 = vmatpush1.bf16.msra.mxu0 %v517_v15  ;;  %701 = vmatpush1.bf16.msra.mxu1 %v519_v17 }
 0x102   : > { %942 = vmatmul.mubr.msk.bf16.gmra.mrb[12].mxu0 %vm321_vm0, %v982_v20  ;;  %944 = vmatmul.mubr.msk.bf16.gmra.mrb[12].mxu1 %vm321_vm0, %v982_v20 }
 0x103   : > { %679 = vmatprep.mubr.bf16.mxu0 %v1007_v0  ;;  %732 = vmatprep.mubr.bf16.mxu1 %v1007_v0 }
 0x10a   : > { %945 = vmatmul.mubr.msk.bf16.vlgmr.msra.gmra.mrb[16].mxu0 %vm321_vm0, %v981_v62  ;;  %947 = vmatmul.mubr.msk.bf16.vlgmr.msra.gmra.mrb[16].mxu1 %vm321_vm0, %v981_v62 }
 0x10b   : > { %689 = vmatprep.mubr.bf16.mxu0 %v1007_v0  ;;  %742 = vmatprep.mubr.bf16.mxu1 %v1007_v0 }
 0x112   : > { %946 = vmatmul.mubr.msk.bf16.gmra.mrb[20].mxu0 %vm321_vm0, %v982_v20  ;;  %948 = vmatmul.mubr.msk.bf16.gmra.mrb[20].mxu1 %vm321_vm0, %v982_v20 }
 0x1cd   : > { %v575_v21 = vpop.f32.mrb[8].mxu0  ;;  %v628_v22 = vpop.f32.mrb[8].mxu1 }
 0x1ce   : > { %v577_v23 = vpop.f32.mrb[9].mxu0  ;;  %v630_v25 = vpop.f32.mrb[9].mxu1 }
 0x1cf   : > { %v753_v24 = vmax.f32 %v575_v21, %v577_v23  ;;  %v579_v26 = vpop.f32.mrb[10].mxu0  ;;  %v757_v27 = vmax.f32 %v628_v22, %v630_v25  ;;  %v632_v28 = vpop.f32.mrb[10].mxu1 }
 0x1d0   : > { %v581_v29 = vpop.f32.mrb[11].mxu0  ;;  %v634_v31 = vpop.f32.mrb[11].mxu1 }
 0x1d1   : > { %v754_v30 = vmax.f32 %v579_v26, %v581_v29  ;;  %v769_v32 = vmax.f32 %v753_v24, %v757_v27  ;;  %v758_v33 = vmax.f32 %v632_v28, %v634_v31  ;;  %v829_v22 = vpop.permute.xlu0 %828  ;;  %v834_v25 = vpop.permute.xlu1 %833 }
 0x1d3   : > { %v770_v34 = vmax.f32 %v754_v30, %v758_v33 }
 0x1d5   : > { %v585_v35 = vpop.f32.mrb[12].mxu0  ;;  %v638_v0 = vpop.f32.mrb[12].mxu1 }
 0x1d6   : > { %v587_v36 = vpop.f32.mrb[13].mxu0  ;;  %v640_v38 = vpop.f32.mrb[13].mxu1 }
 0x1d7   : > { %v755_v37 = vmax.f32 %v585_v35, %v587_v36  ;;  %v589_v39 = vpop.f32.mrb[14].mxu0  ;;  %v759_v40 = vmax.f32 %v638_v0, %v640_v38  ;;  %v642_v41 = vpop.f32.mrb[14].mxu1 }
 0x1d8   : > { %v591_v42 = vpop.f32.mrb[15].mxu0  ;;  %v644_v44 = vpop.f32.mrb[15].mxu1 }
 0x1d9   : > { %v756_v43 = vmax.f32 %v589_v39, %v591_v42  ;;  %v771_v45 = vmax.f32 %v755_v37, %v759_v40  ;;  %v760_v46 = vmax.f32 %v642_v41, %v644_v44 }
 0x1db   : > { %v772_v47 = vmax.f32 %v756_v43, %v760_v46 }
 0x1dd   : > { %v681_v48 = vpop.f32.mrb[16].mxu0  ;;  %v734_v50 = vpop.f32.mrb[16].mxu1 }
 0x1de   : > { %v683_v51 = vpop.f32.mrb[17].mxu0  ;;  %v736_v53 = vpop.f32.mrb[17].mxu1 }
 0x1df   : > { %v761_v52 = vmax.f32 %v681_v48, %v683_v51  ;;  %v685_v54 = vpop.f32.mrb[18].mxu0  ;;  %v765_v55 = vmax.f32 %v734_v50, %v736_v53  ;;  %v738_v56 = vpop.f32.mrb[18].mxu1 }
 0x1e0   : > { %v687_v57 = vpop.f32.mrb[19].mxu0  ;;  %v740_v59 = vpop.f32.mrb[19].mxu1 }
 0x1e1   : > { %v762_v58 = vmax.f32 %v685_v54, %v687_v57  ;;  %v773_v60 = vmax.f32 %v761_v52, %v765_v55  ;;  %v766_v61 = vmax.f32 %v738_v56, %v740_v59 }
 0x1e3   : > { %v777_v62 = vmax.f32 %v769_v32, %v773_v60  ;;  %v774_v63 = vmax.f32 %v762_v58, %v766_v61 }
 0x1e5   : > { %v691_v1 = vpop.f32.mrb[20].mxu0  ;;  %v778_v3 = vmax.f32 %v770_v34, %v774_v63  ;;  %v744_v4 = vpop.f32.mrb[20].mxu1  ;;  %v836_v6 = vadd.f32 %v819_v49, %v777_v62 }
 0x1e6   : > { %v693_v5 = vpop.f32.mrb[21].mxu0  ;;  %v746_v8 = vpop.f32.mrb[21].mxu1 }
 0x1e7   : > { %v763_v7 = vmax.f32 %v691_v1, %v693_v5  ;;  %v695_v9 = vpop.f32.mrb[22].mxu0  ;;  %v767_v10 = vmax.f32 %v744_v4, %v746_v8  ;;  %v748_v11 = vpop.f32.mrb[22].mxu1  ;;  %v840_v13 = vmax.f32 %v836_v6, 0.0  ;;  %v837_v14 = vadd.f32 %v824_v2, %v778_v3 }
 0x1e8   : > { %v697_v12 = vpop.f32.mrb[23].mxu0  ;;  %v750_v16 = vpop.f32.mrb[23].mxu1 }
 0x1e9   : > { %v764_v15 = vmax.f32 %v695_v9, %v697_v12  ;;  %v775_v17 = vmax.f32 %v763_v7, %v767_v10  ;;  %v768_v18 = vmax.f32 %v748_v11, %v750_v16  ;;  %844 = vst [vmem:[%s252_s26] sm:$0xff] %v840_v13  ;;  %v841_v19 = vmax.f32 %v837_v14, 0.0 }
 0x1eb   : > { %v779_v20 = vmax.f32 %v771_v45, %v775_v17  ;;  %v776_v21 = vmax.f32 %v764_v15, %v768_v18  ;;  %845 = vst [vmem:[%s252_s26 + $0x8] sm:$0xff] %v841_v19 }
 0x1ed   : > { %v838_v23 = vadd.f32 %v829_v22, %v779_v20  ;;  %v780_v24 = vmax.f32 %v772_v47, %v776_v21 }
 0x1ef   : > { %v842_v26 = vmax.f32 %v838_v23, 0.0  ;;  %v839_v27 = vadd.f32 %v834_v25, %v780_v24 }
 0x1f1   : > { %846 = vst [vmem:[%s252_s26 + $0x10] sm:$0xff] %v842_v26  ;;  %v843_v28 = vmax.f32 %v839_v27, 0.0 }
 0x1f3   : > { %847 = vst [vmem:[%s252_s26 + $0x18] sm:$0xff] %v843_v28 }
 0x1f4 PF: > { %s15_s20 = sadd.s32 1, %s1005_s20   ;;  %s1134_s18 = smov %s1001_s19 }
 0x1f5   : > { %p12_p5 = scmp.ge.s32.totalorder %s15_s20, 4   ;;  %s1135_s19 = smov %s1137_s21 }
 0x1f7   :  { %14 = sbr.rel (!%p12_p5) target bundleno = 2 (0x2), region = 82 }

// kernel: _lambda_.5
= control target key start
LH: loop header
LB: loop body
LE: loop exit
PB: predicated region body
PF: predicated region fallthrough
CT: control target
= control target key end

     0   :  { %s1546_s18 = smov 0   ;;  %s1548_s19 = smov 0   ;;  %s1770_s0 = inlined_call_operand.vmem [shape: bf16[2,16,2048], index: 0, kind: input, shape index: {}]   ;;  %s1771_s1 = inlined_call_operand.vmem [shape: bf16[16,16], index: 1, kind: input, shape index: {}]   ;;  %s1772_s2 = inlined_call_operand.vmem [shape: bf16[32,16], index: 2, kind: input, shape index: {}]   ;;  %s1773_s3 = inlined_call_operand.vmem [shape: f32[16,1], index: 3, kind: input, shape index: {}]   ;;  %s1774_s4 = inlined_call_operand.vmem [shape: f32[32,1], index: 4, kind: input, shape index: {}]   ;;  %s1775_s5 = inlined_call_operand.vmem [shape: f32[2,32,128], index: 5, kind: output, shape index: {}]  }
   0x1   :  { %s1550_s20 = smov 0  }
   0x2 LB: > { %s27_s21 = sadd.s32 1, %s1509_s19  ;;  %p1409_p0 = scmp.ge.s32.totalorder %s1513_s20, 1  ;;  %s1513_s20 = sphi %s1550_s20, %s15_s20   ;;  %s1509_s19 = sphi %s1548_s19, %s1777_s19   ;;  %s1505_s18 = sphi %s1546_s18, %s1776_s18  }
   0x3   : > { %p29_p1 = scmp.ge.s32.totalorder %s27_s21, 2  ;;  %p206_p2 = scmp.lt.s32.totalorder %s1513_s20, 3 }
   0x5   : > { %s1779_s21 = smov (%p29_p1, %s27_s21), 0  ;;  %p207_p3 = pnand %p1409_p0, %p206_p2 }
   0x6   : > { %p239_p4 = scmp.lt.s32.totalorder (!%p207_p3), %s1505_s18, 1  ;;  %v1515_v0 = vmov (!%p207_p3), 0   ;;  %v272_v1 = vld [vmem:[%s1773_s3] sm:$0xff] (!%p207_p3)  ;;  %v273_v2 = vld [vmem:[%s1773_s3 + $0x8] sm:$0xff] (!%p207_p3)  ;;  %v1302_v20 = vld [vmem:[%s1774_s4 + $0x10] sm:$0xff] (!%p207_p3)  ;;  %vm369_vm0 = vcmask (!%p207_p3), 130048  }
   0x7   : > { %210 = sbr.rel (%p207_p3) target bundleno = 534 (0x216), region = 40  ;;  %405 = vmatprep.mubr.bf16.mxu0 (!%p207_p3), %v1515_v0  ;;  %448 = vmatprep.mubr.bf16.mxu1 (!%p207_p3), %v1515_v0  ;;  %v1488_v13 = vld [vmem:[%s1771_s1] sm:$0xff] (!%p207_p3)   ;;  %v1301_v38 = vld [vmem:[%s1774_s4 + $0x8] sm:$0xff] (!%p207_p3)  ;;  %v1303_v39 = vld [vmem:[%s1774_s4 + $0x18] sm:$0xff] (!%p207_p3) }
   0x8   : > { %1486 = vset.pattern.permute.xlu0 (!%p207_p3), %v1515_v0  ;;  %1487 = vset.pattern.permute.xlu1 (!%p207_p3), %v1515_v0  ;;  %v1300_v37 = vld [vmem:[%s1774_s4] sm:$0xff] (!%p207_p3) }
   0x9   : > { %276 = vperm.xlu0 (!%p207_p3), %1486, %v272_v1   ;;  %1306 = vperm.xlu1 (!%p207_p3), %1487, %v1300_v37  }
   0xd   : > { %281 = vperm.xlu0 (!%p207_p3), %1486, %v273_v2   ;;  %1311 = vperm.xlu1 (!%p207_p3), %1487, %v1301_v38  }
   0xe   : > { %s1781_s18 = smov (!%p239_p4, %s1505_s18), 1 }
   0xf   : > { %s1459_s24 = sshll.u32 %s1781_s18, 7  ;;  %s1460_s23 = sshll.u32 %s1781_s18, 5 }
  0x10   : > { %s1580_s29 = scalar_lea.vmem %s1770_s0, %s1459_s24  ;;  %s252_s25 = scalar_lea.vmem %s1775_s5, %s1460_s23 }
  0x11   : > { %v254_v3 = vld [vmem:[%s1580_s29] sm:$0xff]  ;;  %v255_v5 = vld [vmem:[%s1580_s29 + $0x8] sm:$0xff]  ;;  %v256_v9 = vld [vmem:[%s1580_s29 + $0x10] sm:$0xff]  ;;  %1316 = vperm.xlu0 %1486, %v1302_v20   ;;  %1321 = vperm.xlu1 %1487, %v1303_v39  }
  0x12   : > { %v262_v4 = vld [vmem:[%s1580_s29 + $0x40] sm:$0xff]  ;;  %v263_v7 = vld [vmem:[%s1580_s29 + $0x48] sm:$0xff]  ;;  %v264_v10 = vld [vmem:[%s1580_s29 + $0x50] sm:$0xff] }
  0x13   : > { %v1416_v6 = vcombine.high %v254_v3, %v262_v4  ;;  %v1415_v8 = vcombine.low %v254_v3, %v262_v4  ;;  %v1418_v11 = vcombine.high %v255_v5, %v263_v7  ;;  %v1417_v12 = vcombine.low %v255_v5, %v263_v7  ;;  %v257_v15 = vld [vmem:[%s1580_s29 + $0x18] sm:$0xff]  ;;  %v258_v18 = vld [vmem:[%s1580_s29 + $0x20] sm:$0xff]  ;;  %v259_v22 = vld [vmem:[%s1580_s29 + $0x28] sm:$0xff] }
  0x14   : > { %v1420_v14 = vcombine.high %v256_v9, %v264_v10  ;;  %v265_v16 = vld [vmem:[%s1580_s29 + $0x58] sm:$0xff]  ;;  %v266_v19 = vld [vmem:[%s1580_s29 + $0x60] sm:$0xff]  ;;  %v1419_v21 = vcombine.low %v256_v9, %v264_v10  ;;  %v267_v23 = vld [vmem:[%s1580_s29 + $0x68] sm:$0xff] }
  0x15   : > { %373 = vmatprep.subr.bf16.mxu0 %v1416_v6  ;;  %v1422_v17 = vcombine.high %v257_v15, %v265_v16  ;;  %416 = vmatprep.subr.bf16.mxu1 %v1418_v11  ;;  %v1421_v24 = vcombine.low %v257_v15, %v265_v16  ;;  %v1424_v25 = vcombine.high %v258_v18, %v266_v19  ;;  %v260_v27 = vld [vmem:[%s1580_s29 + $0x30] sm:$0xff]  ;;  %v261_v30 = vld [vmem:[%s1580_s29 + $0x38] sm:$0xff]  ;;  %v1647_v15 = vld [vmem:[%s1772_s2] sm:$0xff]  }
  0x16   : > { %374 = vmatpush1.bf16.msra.mxu0 %v1415_v8  ;;  %417 = vmatpush1.bf16.msra.mxu1 %v1417_v12  ;;  %v1426_v26 = vcombine.high %v259_v22, %v267_v23  ;;  %v268_v28 = vld [vmem:[%s1580_s29 + $0x70] sm:$0xff]  ;;  %v1423_v29 = vcombine.low %v258_v18, %v266_v19  ;;  %v269_v31 = vld [vmem:[%s1580_s29 + $0x78] sm:$0xff]  ;;  %v1425_v32 = vcombine.low %v259_v22, %v267_v23 }
  0x17   : > { %459 = vmatprep.subr.bf16.mxu0 %v1420_v14  ;;  %502 = vmatprep.subr.bf16.mxu1 %v1422_v17  ;;  %v1428_v33 = vcombine.high %v260_v27, %v268_v28  ;;  %v1430_v34 = vcombine.high %v261_v30, %v269_v31  ;;  %v1427_v35 = vcombine.low %v260_v27, %v268_v28 }
  0x18   : > { %v1429_v36 = vcombine.low %v261_v30, %v269_v31 }
  0x19   : > { %1431 = vmatmul.mubr.msk.bf16.vlgmr.msra.gmra.mrb[0].mxu0 %vm369_vm0, %v1488_v13  ;;  %1432 = vmatmul.mubr.msk.bf16.vlgmr.msra.gmra.mrb[0].mxu1 %vm369_vm0, %v1488_v13 }
  0x1a   : > { %460 = vmatpush1.bf16.msra.mxu0 %v1419_v21  ;;  %503 = vmatpush1.bf16.msra.mxu1 %v1421_v24 }
  0x1b   : > { %491 = vmatprep.mubr.bf16.mxu0 %v1515_v0  ;;  %534 = vmatprep.mubr.bf16.mxu1 %v1515_v0 }
  0x1c   : > { %545 = vmatprep.subr.bf16.mxu0 %v1424_v25  ;;  %588 = vmatprep.subr.bf16.mxu1 %v1426_v26 }
  0x21   : > { %1433 = vmatmul.mubr.msk.bf16.vlgmr.msra.gmra.mrb[4].mxu0 %vm369_vm0, %v1488_v13  ;;  %1434 = vmatmul.mubr.msk.bf16.vlgmr.msra.gmra.mrb[4].mxu1 %vm369_vm0, %v1488_v13 }
  0x22   : > { %546 = vmatpush1.bf16.msra.mxu0 %v1423_v29  ;;  %589 = vmatpush1.bf16.msra.mxu1 %v1425_v32 }
  0x23   : > { %577 = vmatprep.mubr.bf16.mxu0 %v1515_v0  ;;  %620 = vmatprep.mubr.bf16.mxu1 %v1515_v0 }
  0x24   : > { %631 = vmatprep.subr.bf16.mxu0 %v1428_v33  ;;  %674 = vmatprep.subr.bf16.mxu1 %v1430_v34 }
  0x29   : > { %1435 = vmatmul.mubr.msk.bf16.vlgmr.msra.gmra.mrb[8].mxu0 %vm369_vm0, %v1488_v13  ;;  %1436 = vmatmul.mubr.msk.bf16.vlgmr.msra.gmra.mrb[8].mxu1 %vm369_vm0, %v1488_v13 }
  0x2a   : > { %632 = vmatpush1.bf16.msra.mxu0 %v1427_v35  ;;  %675 = vmatpush1.bf16.msra.mxu1 %v1429_v36 }
  0x2b   : > { %663 = vmatprep.mubr.bf16.mxu0 %v1515_v0  ;;  %706 = vmatprep.mubr.bf16.mxu1 %v1515_v0 }
  0x31   : > { %1437 = vmatmul.mubr.msk.bf16.vlgmr.msra.gmra.mrb[12].mxu0 %vm369_vm0, %v1488_v13  ;;  %1438 = vmatmul.mubr.msk.bf16.vlgmr.msra.gmra.mrb[12].mxu1 %vm369_vm0, %v1488_v13 }
  0x32   : > { %817 = vmatprep.mubr.bf16.mxu0 %v1515_v0  ;;  %870 = vmatprep.mubr.bf16.mxu1 %v1515_v0 }
  0x88   : > { %v1629_v40 = vpop.permute.xlu0 %276 }
  0x8c   : > { %v1631_v41 = vpop.permute.xlu0 %281 }
  0xec   : > { %v407_v42 = vpop.f32.mrb[0].mxu0  ;;  %v450_v44 = vpop.f32.mrb[0].mxu1 }
  0xed   : > { %v408_v43 = vadd.f32 %v407_v42, %v1629_v40  ;;  %v409_v45 = vpop.f32.mrb[1].mxu0  ;;  %v451_v46 = vadd.f32 %v450_v44, %v1629_v40  ;;  %v452_v48 = vpop.f32.mrb[1].mxu1 }
  0xee   : > { %v410_v47 = vadd.f32 %v409_v45, %v1629_v40  ;;  %v411_v49 = vpop.f32.mrb[2].mxu0  ;;  %v453_v50 = vadd.f32 %v452_v48, %v1629_v40  ;;  %v454_v52 = vpop.f32.mrb[2].mxu1 }
  0xef   : > { %v412_v51 = vadd.f32 %v411_v49, %v1631_v41  ;;  %v413_v53 = vpop.f32.mrb[3].mxu0  ;;  %v455_v54 = vadd.f32 %v454_v52, %v1631_v41  ;;  %v456_v56 = vpop.f32.mrb[3].mxu1  ;;  %v717_v57 = vmax.f32 %v408_v43, 0.0  ;;  %v719_v60 = vmax.f32 %v451_v46, 0.0  ;;  %v1666_v46 = vld [vmem:[%s1772_s2 + $0x8] sm:$0xff]  }
  0xf0   : > { %v414_v55 = vadd.f32 %v413_v53, %v1631_v41  ;;  %v457_v59 = vadd.f32 %v456_v56, %v1631_v41  ;;  %v718_v61 = vmax.f32 %v410_v47, 0.0  ;;  %v720_v1 = vmax.f32 %v453_v50, 0.0 }
  0xf1   : > { %v733_v58 = vmax.f32 %v412_v51, 0.0  ;;  %v735_v62 = vmax.f32 %v455_v54, 0.0 }
  0xf2   : > { %v734_v63 = vmax.f32 %v414_v55, 0.0  ;;  %v736_v3 = vmax.f32 %v457_v59, 0.0 }
  0xf3   : > { %v749_v2 = vpack.c.bf16 %v733_v58, %v717_v57  ;;  %v751_v4 = vpack.c.bf16 %v735_v62, %v719_v60 }
  0xf4   : > { %v750_v5 = vpack.c.bf16 %v734_v63, %v718_v61  ;;  %v493_v6 = vpop.f32.mrb[4].mxu0  ;;  %v752_v7 = vpack.c.bf16 %v736_v3, %v720_v1  ;;  %v536_v9 = vpop.f32.mrb[4].mxu1 }
  0xf5   : > { %v494_v8 = vadd.f32 %v493_v6, %v1629_v40  ;;  %v495_v10 = vpop.f32.mrb[5].mxu0  ;;  %v537_v11 = vadd.f32 %v536_v9, %v1629_v40  ;;  %v538_v13 = vpop.f32.mrb[5].mxu1 }
  0xf6   : > { %v496_v12 = vadd.f32 %v495_v10, %v1629_v40  ;;  %v497_v14 = vpop.f32.mrb[6].mxu0  ;;  %785 = vmatprep.subr.bf16.mxu0 %v750_v5  ;;  %v539_v16 = vadd.f32 %v538_v13, %v1629_v40  ;;  %v540_v18 = vpop.f32.mrb[6].mxu1  ;;  %838 = vmatprep.subr.bf16.mxu1 %v752_v7 }
  0xf7   : > { %v498_v17 = vadd.f32 %v497_v14, %v1631_v41  ;;  %v499_v19 = vpop.f32.mrb[7].mxu0  ;;  %786 = vmatpush1.bf16.msra.mxu0 %v749_v2  ;;  %v541_v20 = vadd.f32 %v540_v18, %v1631_v41  ;;  %v542_v22 = vpop.f32.mrb[7].mxu1  ;;  %839 = vmatpush1.bf16.msra.mxu1 %v751_v4  ;;  %v721_v23 = vmax.f32 %v494_v8, 0.0  ;;  %v723_v26 = vmax.f32 %v537_v11, 0.0 }
  0xf8   : > { %v500_v21 = vadd.f32 %v499_v19, %v1631_v41  ;;  %v543_v25 = vadd.f32 %v542_v22, %v1631_v41  ;;  %v722_v27 = vmax.f32 %v496_v12, 0.0  ;;  %v724_v30 = vmax.f32 %v539_v16, 0.0 }
  0xf9   : > { %v737_v24 = vmax.f32 %v498_v17, 0.0  ;;  %v739_v28 = vmax.f32 %v541_v20, 0.0 }
  0xfa   : > { %v738_v29 = vmax.f32 %v500_v21, 0.0  ;;  %1441 = vmatmul.mubr.msk.bf16.vlgmr.msra.gmra.mrb[16].mxu0 %vm369_vm0, %v1647_v15  ;;  %v740_v32 = vmax.f32 %v543_v25, 0.0  ;;  %1443 = vmatmul.mubr.msk.bf16.vlgmr.msra.gmra.mrb[16].mxu1 %vm369_vm0, %v1647_v15 }
  0xfb   : > { %v753_v31 = vpack.c.bf16 %v737_v24, %v721_v23  ;;  %827 = vmatprep.mubr.bf16.mxu0 %v1515_v0  ;;  %v755_v33 = vpack.c.bf16 %v739_v28, %v723_v26  ;;  %880 = vmatprep.mubr.bf16.mxu1 %v1515_v0 }
  0xfc   : > { %v754_v34 = vpack.c.bf16 %v738_v29, %v722_v27  ;;  %v579_v35 = vpop.f32.mrb[8].mxu0  ;;  %v756_v36 = vpack.c.bf16 %v740_v32, %v724_v30  ;;  %v622_v38 = vpop.f32.mrb[8].mxu1 }
  0xfd   : > { %v580_v37 = vadd.f32 %v579_v35, %v1629_v40  ;;  %v581_v39 = vpop.f32.mrb[9].mxu0  ;;  %v623_v42 = vadd.f32 %v622_v38, %v1629_v40  ;;  %v624_v44 = vpop.f32.mrb[9].mxu1 }
  0xfe   : > { %v582_v43 = vadd.f32 %v581_v39, %v1629_v40  ;;  %v583_v45 = vpop.f32.mrb[10].mxu0  ;;  %891 = vmatprep.subr.bf16.mxu0 %v754_v34  ;;  %v625_v47 = vadd.f32 %v624_v44, %v1629_v40  ;;  %v626_v49 = vpop.f32.mrb[10].mxu1  ;;  %944 = vmatprep.subr.bf16.mxu1 %v756_v36 }
  0xff   : > { %v584_v48 = vadd.f32 %v583_v45, %v1631_v41  ;;  %v585_v50 = vpop.f32.mrb[11].mxu0  ;;  %892 = vmatpush1.bf16.msra.mxu0 %v753_v31  ;;  %v627_v51 = vadd.f32 %v626_v49, %v1631_v41  ;;  %v628_v53 = vpop.f32.mrb[11].mxu1  ;;  %945 = vmatpush1.bf16.msra.mxu1 %v755_v33  ;;  %v725_v54 = vmax.f32 %v580_v37, 0.0  ;;  %v727_v57 = vmax.f32 %v623_v42, 0.0 }
 0x100   : > { %v586_v52 = vadd.f32 %v585_v50, %v1631_v41  ;;  %v629_v56 = vadd.f32 %v628_v53, %v1631_v41  ;;  %v726_v58 = vmax.f32 %v582_v43, 0.0  ;;  %v728_v61 = vmax.f32 %v625_v47, 0.0 }
 0x101   : > { %v741_v55 = vmax.f32 %v584_v48, 0.0  ;;  %v743_v59 = vmax.f32 %v627_v51, 0.0 }
 0x102   : > { %v742_v60 = vmax.f32 %v586_v52, 0.0  ;;  %1442 = vmatmul.mubr.msk.bf16.gmra.mrb[20].mxu0 %vm369_vm0, %v1666_v46  ;;  %v744_v63 = vmax.f32 %v629_v56, 0.0  ;;  %1444 = vmatmul.mubr.msk.bf16.gmra.mrb[20].mxu1 %vm369_vm0, %v1666_v46 }
 0x103   : > { %v757_v62 = vpack.c.bf16 %v741_v55, %v725_v54  ;;  %923 = vmatprep.mubr.bf16.mxu0 %v1515_v0  ;;  %v759_v1 = vpack.c.bf16 %v743_v59, %v727_v57  ;;  %976 = vmatprep.mubr.bf16.mxu1 %v1515_v0 }
 0x104   : > { %v758_v2 = vpack.c.bf16 %v742_v60, %v726_v58  ;;  %v665_v3 = vpop.f32.mrb[12].mxu0  ;;  %v760_v4 = vpack.c.bf16 %v744_v63, %v728_v61  ;;  %v708_v6 = vpop.f32.mrb[12].mxu1 }
 0x105   : > { %v666_v5 = vadd.f32 %v665_v3, %v1629_v40  ;;  %v667_v7 = vpop.f32.mrb[13].mxu0  ;;  %v709_v8 = vadd.f32 %v708_v6, %v1629_v40  ;;  %v710_v10 = vpop.f32.mrb[13].mxu1 }
 0x106   : > { %v668_v9 = vadd.f32 %v667_v7, %v1629_v40  ;;  %v669_v11 = vpop.f32.mrb[14].mxu0  ;;  %997 = vmatprep.subr.bf16.mxu0 %v758_v2  ;;  %v711_v12 = vadd.f32 %v710_v10, %v1629_v40  ;;  %v712_v14 = vpop.f32.mrb[14].mxu1  ;;  %1050 = vmatprep.subr.bf16.mxu1 %v760_v4 }
 0x107   : > { %v670_v13 = vadd.f32 %v669_v11, %v1631_v41  ;;  %v671_v16 = vpop.f32.mrb[15].mxu0  ;;  %v713_v17 = vadd.f32 %v712_v14, %v1631_v41  ;;  %v714_v19 = vpop.f32.mrb[15].mxu1  ;;  %v729_v20 = vmax.f32 %v666_v5, 0.0  ;;  %v731_v23 = vmax.f32 %v709_v8, 0.0 }
 0x108   : > { %v672_v18 = vadd.f32 %v671_v16, %v1631_v41  ;;  %v715_v22 = vadd.f32 %v714_v19, %v1631_v41  ;;  %v730_v24 = vmax.f32 %v668_v9, 0.0  ;;  %v732_v40 = vmax.f32 %v711_v12, 0.0 }
 0x109   : > { %v745_v21 = vmax.f32 %v670_v13, 0.0  ;;  %v747_v25 = vmax.f32 %v713_v17, 0.0 }
 0x10a   : > { %v746_v26 = vmax.f32 %v672_v18, 0.0  ;;  %1445 = vmatmul.mubr.msk.bf16.vlgmr.msra.gmra.mrb[24].mxu0 %vm369_vm0, %v1647_v15  ;;  %v748_v28 = vmax.f32 %v715_v22, 0.0  ;;  %1447 = vmatmul.mubr.msk.bf16.vlgmr.msra.gmra.mrb[24].mxu1 %vm369_vm0, %v1647_v15 }
 0x10b   : > { %v761_v27 = vpack.c.bf16 %v745_v21, %v729_v20  ;;  %998 = vmatpush1.bf16.msra.mxu0 %v757_v62  ;;  %v763_v29 = vpack.c.bf16 %v747_v25, %v731_v23  ;;  %1051 = vmatpush1.bf16.msra.mxu1 %v759_v1 }
 0x10c   : > { %v762_v30 = vpack.c.bf16 %v746_v26, %v730_v24  ;;  %933 = vmatprep.mubr.bf16.mxu0 %v1515_v0  ;;  %v764_v41 = vpack.c.bf16 %v748_v28, %v732_v40  ;;  %986 = vmatprep.mubr.bf16.mxu1 %v1515_v0 }
 0x10e   : > { %1103 = vmatprep.subr.bf16.mxu0 %v762_v30  ;;  %1156 = vmatprep.subr.bf16.mxu1 %v764_v41 }
 0x112   : > { %1446 = vmatmul.mubr.msk.bf16.gmra.mrb[28].mxu0 %vm369_vm0, %v1666_v46  ;;  %1448 = vmatmul.mubr.msk.bf16.gmra.mrb[28].mxu1 %vm369_vm0, %v1666_v46 }
 0x113   : > { %1029 = vmatprep.mubr.bf16.mxu0 %v1515_v0  ;;  %1082 = vmatprep.mubr.bf16.mxu1 %v1515_v0 }
 0x11a   : > { %1449 = vmatmul.mubr.msk.bf16.vlgmr.msra.gmra.mrb[32].mxu0 %vm369_vm0, %v1647_v15  ;;  %1451 = vmatmul.mubr.msk.bf16.vlgmr.msra.gmra.mrb[32].mxu1 %vm369_vm0, %v1647_v15 }
 0x11b   : > { %1104 = vmatpush1.bf16.msra.mxu0 %v761_v27  ;;  %1157 = vmatpush1.bf16.msra.mxu1 %v763_v29 }
 0x11c   : > { %1039 = vmatprep.mubr.bf16.mxu0 %v1515_v0  ;;  %1092 = vmatprep.mubr.bf16.mxu1 %v1515_v0 }
 0x122   : > { %1450 = vmatmul.mubr.msk.bf16.gmra.mrb[36].mxu0 %vm369_vm0, %v1666_v46  ;;  %1452 = vmatmul.mubr.msk.bf16.gmra.mrb[36].mxu1 %vm369_vm0, %v1666_v46 }
 0x123   : > { %1135 = vmatprep.mubr.bf16.mxu0 %v1515_v0  ;;  %1188 = vmatprep.mubr.bf16.mxu1 %v1515_v0 }
 0x12a   : > { %1453 = vmatmul.mubr.msk.bf16.vlgmr.msra.gmra.mrb[40].mxu0 %vm369_vm0, %v1647_v15  ;;  %1455 = vmatmul.mubr.msk.bf16.vlgmr.msra.gmra.mrb[40].mxu1 %vm369_vm0, %v1647_v15 }
 0x12b   : > { %1145 = vmatprep.mubr.bf16.mxu0 %v1515_v0  ;;  %1198 = vmatprep.mubr.bf16.mxu1 %v1515_v0 }
 0x132   : > { %1454 = vmatmul.mubr.msk.bf16.gmra.mrb[44].mxu0 %vm369_vm0, %v1666_v46  ;;  %1456 = vmatmul.mubr.msk.bf16.gmra.mrb[44].mxu1 %vm369_vm0, %v1666_v46 }
 0x1cd   : > { %v819_v31 = vpop.f32.mrb[16].mxu0  ;;  %v872_v32 = vpop.f32.mrb[16].mxu1 }
 0x1ce   : > { %v821_v33 = vpop.f32.mrb[17].mxu0  ;;  %v874_v35 = vpop.f32.mrb[17].mxu1 }
 0x1cf   : > { %v1209_v34 = vmax.f32 %v819_v31, %v821_v33  ;;  %v823_v36 = vpop.f32.mrb[18].mxu0  ;;  %v1213_v37 = vmax.f32 %v872_v32, %v874_v35  ;;  %v876_v38 = vpop.f32.mrb[18].mxu1 }
 0x1d0   : > { %v825_v39 = vpop.f32.mrb[19].mxu0  ;;  %v878_v42 = vpop.f32.mrb[19].mxu1 }
 0x1d1   : > { %v1210_v15 = vmax.f32 %v823_v36, %v825_v39  ;;  %v1721_v43 = vmax.f32 %v1209_v34, %v1213_v37  ;;  %v1214_v0 = vmax.f32 %v876_v38, %v878_v42 }
 0x1d3   : > { %v1723_v44 = vmax.f32 %v1210_v15, %v1214_v0 }
 0x1d5   : > { %v829_v45 = vpop.f32.mrb[20].mxu0  ;;  %v882_v47 = vpop.f32.mrb[20].mxu1 }
 0x1d6   : > { %v831_v48 = vpop.f32.mrb[21].mxu0  ;;  %v884_v49 = vpop.f32.mrb[21].mxu1 }
 0x1d7   : > { %v1211_v46 = vmax.f32 %v829_v45, %v831_v48  ;;  %v833_v50 = vpop.f32.mrb[22].mxu0  ;;  %v1215_v51 = vmax.f32 %v882_v47, %v884_v49  ;;  %v886_v52 = vpop.f32.mrb[22].mxu1 }
 0x1d8   : > { %v835_v53 = vpop.f32.mrb[23].mxu0  ;;  %v888_v55 = vpop.f32.mrb[23].mxu1 }
 0x1d9   : > { %v1212_v54 = vmax.f32 %v833_v50, %v835_v53  ;;  %v1725_v56 = vmax.f32 %v1211_v46, %v1215_v51  ;;  %v1216_v57 = vmax.f32 %v886_v52, %v888_v55 }
 0x1db   : > { %v1727_v58 = vmax.f32 %v1212_v54, %v1216_v57 }
 0x1dd   : > { %v925_v59 = vpop.f32.mrb[24].mxu0  ;;  %v978_v60 = vpop.f32.mrb[24].mxu1 }
 0x1de   : > { %v927_v61 = vpop.f32.mrb[25].mxu0  ;;  %v980_v63 = vpop.f32.mrb[25].mxu1 }
 0x1df   : > { %v1217_v62 = vmax.f32 %v925_v59, %v927_v61  ;;  %v929_v1 = vpop.f32.mrb[26].mxu0  ;;  %v1221_v2 = vmax.f32 %v978_v60, %v980_v63  ;;  %v982_v3 = vpop.f32.mrb[26].mxu1 }
 0x1e0   : > { %v931_v4 = vpop.f32.mrb[27].mxu0  ;;  %v984_v6 = vpop.f32.mrb[27].mxu1 }
 0x1e1   : > { %v1218_v5 = vmax.f32 %v929_v1, %v931_v4  ;;  %v1729_v7 = vmax.f32 %v1217_v62, %v1221_v2  ;;  %v1222_v8 = vmax.f32 %v982_v3, %v984_v6 }
 0x1e3   : > { %v1257_v9 = vmax.f32 %v1721_v43, %v1729_v7  ;;  %v1733_v10 = vmax.f32 %v1218_v5, %v1222_v8 }
 0x1e5   : > { %v935_v11 = vpop.f32.mrb[28].mxu0  ;;  %v1258_v12 = vmax.f32 %v1723_v44, %v1733_v10  ;;  %v988_v13 = vpop.f32.mrb[28].mxu1 }
 0x1e6   : > { %v937_v14 = vpop.f32.mrb[29].mxu0  ;;  %v990_v17 = vpop.f32.mrb[29].mxu1 }
 0x1e7   : > { %v1219_v16 = vmax.f32 %v935_v11, %v937_v14  ;;  %v939_v18 = vpop.f32.mrb[30].mxu0  ;;  %v1223_v19 = vmax.f32 %v988_v13, %v990_v17  ;;  %v992_v20 = vpop.f32.mrb[30].mxu1 }
 0x1e8   : > { %v941_v21 = vpop.f32.mrb[31].mxu0  ;;  %v994_v23 = vpop.f32.mrb[31].mxu1 }
 0x1e9   : > { %v1220_v22 = vmax.f32 %v939_v18, %v941_v21  ;;  %v1737_v24 = vmax.f32 %v1219_v16, %v1223_v19  ;;  %v1224_v25 = vmax.f32 %v992_v20, %v994_v23  ;;  %v1307_v13 = vpop.permute.xlu1 %1306 }
 0x1eb   : > { %v1259_v26 = vmax.f32 %v1725_v56, %v1737_v24  ;;  %v1741_v40 = vmax.f32 %v1220_v22, %v1224_v25 }
 0x1ed   : > { %v1031_v27 = vpop.f32.mrb[32].mxu0  ;;  %v1260_v28 = vmax.f32 %v1727_v58, %v1741_v40  ;;  %v1084_v29 = vpop.f32.mrb[32].mxu1 }
 0x1ee   : > { %v1033_v30 = vpop.f32.mrb[33].mxu0  ;;  %v1086_v31 = vpop.f32.mrb[33].mxu1 }
 0x1ef   : > { %v1225_v41 = vmax.f32 %v1031_v27, %v1033_v30  ;;  %v1035_v32 = vpop.f32.mrb[34].mxu0  ;;  %v1229_v33 = vmax.f32 %v1084_v29, %v1086_v31  ;;  %v1088_v34 = vpop.f32.mrb[34].mxu1 }
 0x1f0   : > { %v1037_v35 = vpop.f32.mrb[35].mxu0  ;;  %v1090_v37 = vpop.f32.mrb[35].mxu1 }
 0x1f1   : > { %v1226_v36 = vmax.f32 %v1035_v32, %v1037_v35  ;;  %v1249_v38 = vmax.f32 %v1225_v41, %v1229_v33  ;;  %v1230_v39 = vmax.f32 %v1088_v34, %v1090_v37 }
 0x1f3   : > { %v1250_v15 = vmax.f32 %v1226_v36, %v1230_v39 }
 0x1f5   : > { %v1041_v42 = vpop.f32.mrb[36].mxu0  ;;  %v1094_v0 = vpop.f32.mrb[36].mxu1 }
 0x1f6   : > { %v1043_v45 = vpop.f32.mrb[37].mxu0  ;;  %v1096_v48 = vpop.f32.mrb[37].mxu1 }
 0x1f7   : > { %v1227_v47 = vmax.f32 %v1041_v42, %v1043_v45  ;;  %v1045_v46 = vpop.f32.mrb[38].mxu0  ;;  %v1231_v49 = vmax.f32 %v1094_v0, %v1096_v48  ;;  %v1098_v50 = vpop.f32.mrb[38].mxu1 }
 0x1f8   : > { %v1047_v51 = vpop.f32.mrb[39].mxu0  ;;  %v1100_v53 = vpop.f32.mrb[39].mxu1 }
 0x1f9   : > { %v1228_v52 = vmax.f32 %v1045_v46, %v1047_v51  ;;  %v1251_v54 = vmax.f32 %v1227_v47, %v1231_v49  ;;  %v1232_v55 = vmax.f32 %v1098_v50, %v1100_v53 }
 0x1fb   : > { %v1252_v57 = vmax.f32 %v1228_v52, %v1232_v55 }
 0x1fd   : > { %v1137_v59 = vpop.f32.mrb[40].mxu0  ;;  %v1190_v60 = vpop.f32.mrb[40].mxu1 }
 0x1fe   : > { %v1139_v61 = vpop.f32.mrb[41].mxu0  ;;  %v1192_v63 = vpop.f32.mrb[41].mxu1 }
 0x1ff   : > { %v1233_v62 = vmax.f32 %v1137_v59, %v1139_v61  ;;  %v1141_v1 = vpop.f32.mrb[42].mxu0  ;;  %v1237_v2 = vmax.f32 %v1190_v60, %v1192_v63  ;;  %v1194_v3 = vpop.f32.mrb[42].mxu1 }
 0x200   : > { %v1143_v4 = vpop.f32.mrb[43].mxu0  ;;  %v1196_v6 = vpop.f32.mrb[43].mxu1 }
 0x201   : > { %v1234_v5 = vmax.f32 %v1141_v1, %v1143_v4  ;;  %v1253_v8 = vmax.f32 %v1233_v62, %v1237_v2  ;;  %v1238_v11 = vmax.f32 %v1194_v3, %v1196_v6 }
 0x203   : > { %v1261_v14 = vmax.f32 %v1249_v38, %v1253_v8  ;;  %v1254_v16 = vmax.f32 %v1234_v5, %v1238_v11  ;;  %v1317_v38 = vpop.permute.xlu0 %1316 }
 0x205   : > { %v1147_v17 = vpop.f32.mrb[44].mxu0  ;;  %v1265_v18 = vmax.f32 %v1257_v9, %v1261_v14  ;;  %v1262_v19 = vmax.f32 %v1250_v15, %v1254_v16  ;;  %v1200_v20 = vpop.f32.mrb[44].mxu1 }
 0x206   : > { %v1149_v21 = vpop.f32.mrb[45].mxu0  ;;  %v1202_v23 = vpop.f32.mrb[45].mxu1 }
 0x207   : > { %v1235_v22 = vmax.f32 %v1147_v17, %v1149_v21  ;;  %v1151_v25 = vpop.f32.mrb[46].mxu0  ;;  %v1266_v27 = vmax.f32 %v1258_v12, %v1262_v19  ;;  %v1239_v29 = vmax.f32 %v1200_v20, %v1202_v23  ;;  %v1204_v30 = vpop.f32.mrb[46].mxu1  ;;  %v1324_v31 = vadd.f32 %v1307_v13, %v1265_v18 }
 0x208   : > { %v1153_v41 = vpop.f32.mrb[47].mxu0  ;;  %v1206_v7 = vpop.f32.mrb[47].mxu1 }
 0x209   : > { %v1236_v43 = vmax.f32 %v1151_v25, %v1153_v41  ;;  %v1312_v9 = vpop.permute.xlu1 %1311  ;;  %v1255_v32 = vmax.f32 %v1235_v22, %v1239_v29  ;;  %v1240_v33 = vmax.f32 %v1204_v30, %v1206_v7  ;;  %v1328_v34 = vmax.f32 %v1324_v31, 0.0 }
 0x20a   : > { %v1325_v35 = vadd.f32 %v1312_v9, %v1266_v27 }
 0x20b   : > { %v1263_v36 = vmax.f32 %v1251_v54, %v1255_v32  ;;  %v1256_v37 = vmax.f32 %v1236_v43, %v1240_v33  ;;  %1332 = vst [vmem:[%s252_s25] sm:$0xff] %v1328_v34 }
 0x20c   : > { %v1329_v44 = vmax.f32 %v1325_v35, 0.0 }
 0x20d   : > { %v1267_v10 = vmax.f32 %v1259_v26, %v1263_v36  ;;  %v1264_v12 = vmax.f32 %v1252_v57, %v1256_v37  ;;  %v1322_v42 = vpop.permute.xlu1 %1321 }
 0x20e   : > { %1333 = vst [vmem:[%s252_s25 + $0x8] sm:$0xff] %v1329_v44 }
 0x20f   : > { %v1326_v39 = vadd.f32 %v1317_v38, %v1267_v10  ;;  %v1268_v15 = vmax.f32 %v1260_v28, %v1264_v12 }
 0x211   : > { %v1330_v0 = vmax.f32 %v1326_v39, 0.0  ;;  %v1327_v45 = vadd.f32 %v1322_v42, %v1268_v15 }
 0x213   : > { %1334 = vst [vmem:[%s252_s25 + $0x10] sm:$0xff] %v1330_v0  ;;  %v1331_v47 = vmax.f32 %v1327_v45, 0.0 }
 0x215   : > { %1335 = vst [vmem:[%s252_s25 + $0x18] sm:$0xff] %v1331_v47 }
 0x216 PF: > { %s15_s20 = sadd.s32 1, %s1513_s20   ;;  %s1776_s18 = smov %s1509_s19 }
 0x217   : > { %p12_p5 = scmp.ge.s32.totalorder %s15_s20, 4   ;;  %s1777_s19 = smov %s1779_s21 }
 0x219   :  { %14 = sbr.rel (!%p12_p5) target bundleno = 2 (0x2), region = 82 }

</bundles_post_ra>
